<compile_context>
chip_gen: v5e
topology: v5e:2x2
jax: 0.10.0
libtpu: 0.0.40
codegen_flags: <defaults>
</compile_context>

<pallas_src>
import functools

import jax
import jax.numpy as jnp
from jax.experimental import pallas as pl
from jax.experimental.pallas import tpu as pltpu


def _round_up(x, m):
    return (x + m - 1) // m * m


def _group_fused_kernel(x_ref, mask_ref, wa0_ref, wa1_ref, ba0_ref, ba1_ref,
                        wc0_ref, wc1_ref, bc0_ref, bc1_ref, o_ref, a_scr,
                        *, k, wp, lq):
    """One batch image per grid step.

    x_ref   : (1, Cin, Mpe)    zero-padded input, channels-first, flat spatial
    mask_ref: (1, Mpe)         1.0 on interior (un-padded) positions, else 0.0
    wa*_ref : (Cin, Cin)       1x1-conv weight halves   (out-ch, in-ch)
    ba*_ref : (Cin, 1)         1x1-conv bias halves
    wc*_ref : (k*k, Cout, Cin) KxK-conv weight halves, taps-major
    bc*_ref : (Cout, 1)        KxK-conv bias halves
    o_ref   : (1, Cout, Lq)    stride-1 conv-2 MFM output over the padded grid
    a_scr   : (Cin, Mpe)       VMEM scratch: fused MFM-1 intermediate
    """
    xp = x_ref[0]                                           # [Cin, Mpe]

    # ---- stage 1: 1x1 conv + MFM; mask zeroes the conv-2 padding border ----
    a0 = jnp.dot(wa0_ref[...], xp, preferred_element_type=jnp.float32)
    a1 = jnp.dot(wa1_ref[...], xp, preferred_element_type=jnp.float32)
    a = jnp.maximum(a0 + ba0_ref[...], a1 + ba1_ref[...]) * mask_ref[...]
    a_scr[...] = a.astype(a_scr.dtype)

    # ---- stage 2: KxK conv as k*k shifted-window dots + MFM ----------------
    cout = o_ref.shape[1]
    acc0 = jnp.zeros((cout, lq), jnp.float32)
    acc1 = jnp.zeros((cout, lq), jnp.float32)
    for ki in range(k):
        for kj in range(k):
            off = ki * wp + kj                              # static flat shift
            win = a_scr[:, off:off + lq]                    # [Cin, Lq]
            tap = ki * k + kj
            acc0 = acc0 + jnp.dot(wc0_ref[tap], win,
                                  preferred_element_type=jnp.float32)
            acc1 = acc1 + jnp.dot(wc1_ref[tap], win,
                                  preferred_element_type=jnp.float32)
    y = jnp.maximum(acc0 + bc0_ref[...], acc1 + bc1_ref[...])
    o_ref[0] = y.astype(o_ref.dtype)


@functools.partial(jax.jit, static_argnames=("in_channels", "out_channels",
                                             "kernel_size", "stride",
                                             "padding", "use_bf16"))
def group_forward(x_nchw, params, *, in_channels, out_channels,
                  kernel_size, stride, padding, use_bf16=False):
    N, Cin, H, W = x_nchw.shape
    k, s, p = kernel_size, stride, padding
    Hp, Wp = H + 2 * p, W + 2 * p
    Mp = Hp * Wp
    Ho1, Wo1 = Hp - k + 1, Wp - k + 1           # stride-1 output extents
    Ho = (Hp - k) // s + 1
    Wo = (Wp - k) // s + 1

    # Lane-aligned flat lengths (multiples of 128).
    Lq = _round_up(Ho1 * Wp, 128)                       # columns conv-2 computes
    Mpe = _round_up(Lq + (k - 1) * (Wp + 1), 128)       # scratch / input length

    compute_dtype = jnp.bfloat16 if use_bf16 else x_nchw.dtype

    # Input: NCHW -> channels-first flat spatial, zero-padded to Mpe.
    # (Zero padding belongs to conv-2's input; the mask below forces the
    #  1x1-conv MFM value in the pad border / tail back to exactly 0.)
    xpad = jnp.pad(x_nchw, ((0, 0), (0, 0), (p, p), (p, p)))
    xflat = xpad.reshape(N, Cin, Mp)
    xflat = jnp.pad(xflat, ((0, 0), (0, 0), (0, Mpe - Mp))).astype(compute_dtype)

    hh = jnp.arange(Hp)
    ww = jnp.arange(Wp)
    m2d = (((hh >= p) & (hh < Hp - p))[:, None]
           & ((ww >= p) & (ww < Wp - p))[None, :]).astype(jnp.float32)
    mask = jnp.pad(m2d.reshape(1, Mp), ((0, 0), (0, Mpe - Mp)))

    # Weights: split MFM halves and transpose for the [Cout, Cin] x [Cin, M] form.
    wa = params["wa"].reshape(2 * in_channels, in_channels)
    wa0 = wa[:in_channels].astype(compute_dtype)
    wa1 = wa[in_channels:].astype(compute_dtype)
    ba0 = params["ba"][:in_channels].reshape(in_channels, 1)
    ba1 = params["ba"][in_channels:].reshape(in_channels, 1)

    wc = jnp.transpose(params["wc"], (2, 3, 0, 1)).reshape(
        k * k, 2 * out_channels, in_channels)
    wc0 = wc[:, :out_channels, :].astype(compute_dtype)
    wc1 = wc[:, out_channels:, :].astype(compute_dtype)
    bc0 = params["bc"][:out_channels].reshape(out_channels, 1)
    bc1 = params["bc"][out_channels:].reshape(out_channels, 1)

    kernel = functools.partial(_group_fused_kernel, k=k, wp=Wp, lq=Lq)
    cst = lambda *_: (0, 0)
    cst3 = lambda *_: (0, 0, 0)

    out_flat = pl.pallas_call(
        kernel,
        out_shape=jax.ShapeDtypeStruct((N, out_channels, Lq), x_nchw.dtype),
        grid_spec=pltpu.PrefetchScalarGridSpec(
            num_scalar_prefetch=0,
            grid=(N,),                                  # one image per step
            in_specs=[
                pl.BlockSpec((1, Cin, Mpe), lambda n: (n, 0, 0)),
                pl.BlockSpec((1, Mpe), cst),            # mask      (resident)
                pl.BlockSpec((Cin, Cin), cst),          # wa0       (resident)
                pl.BlockSpec((Cin, Cin), cst),          # wa1
                pl.BlockSpec((Cin, 1), cst),            # ba0
                pl.BlockSpec((Cin, 1), cst),            # ba1
                pl.BlockSpec((k * k, out_channels, Cin), cst3),   # wc0
                pl.BlockSpec((k * k, out_channels, Cin), cst3),   # wc1
                pl.BlockSpec((out_channels, 1), cst),   # bc0
                pl.BlockSpec((out_channels, 1), cst),   # bc1
            ],
            out_specs=pl.BlockSpec((1, out_channels, Lq), lambda n: (n, 0, 0)),
            scratch_shapes=[pltpu.VMEM((Cin, Mpe), compute_dtype)],
        ),
        compiler_params=pltpu.CompilerParams(
            dimension_semantics=("parallel",),          # shard N over v7x's 2 TCs
            vmem_limit_bytes=48 * 1024 * 1024,          # < 64 MiB v7x physical
        ),
    )(xflat, mask, wa0, wa1, ba0, ba1, wc0, wc1, bc0, bc1)

    # Extract valid stride-s positions from the stride-1 padded-grid output and
    # reshape back to NCHW.  (stride > 1 recomputes some rows/cols; compute is
    # negligible at these channel counts.)
    y = out_flat[:, :, :Ho1 * Wp].reshape(N, out_channels, Ho1, Wp)
    y = y[:, :, ::s, :Wo1:s]
    assert y.shape == (N, out_channels, Ho, Wo)
    return y


def init_group_params(key, in_channels, out_channels, kernel_size):
    """Deterministic synthetic params matching group.__init__ shapes (OIHW)."""
    k1, k2, k3, k4 = jax.random.split(key, 4)
    wa = jax.random.normal(k1, (2 * in_channels, in_channels, 1, 1),
                           jnp.float32) * 0.1
    ba = jax.random.normal(k2, (2 * in_channels,), jnp.float32) * 0.1
    wc = jax.random.normal(
        k3, (2 * out_channels, in_channels, kernel_size, kernel_size),
        jnp.float32) * 0.1
    bc = jax.random.normal(k4, (2 * out_channels,), jnp.float32) * 0.1
    return dict(wa=wa, ba=ba, wc=wc, bc=bc)


# ------------------------- pure-JAX reference (for sanity) -------------------
def _ref_mfm_conv(x_nchw, w, b, out_channels, stride, padding):
    y = jax.lax.conv_general_dilated(
        x_nchw, w, (stride, stride),
        [(padding, padding), (padding, padding)],
        dimension_numbers=("NCHW", "OIHW", "NCHW"))
    y = y + b[None, :, None, None]
    return jnp.maximum(y[:, :out_channels], y[:, out_channels:])


def _ref_group(x, params, in_channels, out_channels, stride, padding):
    x = _ref_mfm_conv(x, params["wa"], params["ba"], in_channels, 1, 0)
    x = _ref_mfm_conv(x, params["wc"], params["bc"], out_channels, stride, padding)
    return x


if __name__ == "__main__":
    in_channels, out_channels = 4, 8
    kernel_size, stride, padding = 3, 1, 1
    N, H, W = 2, 16, 16

    key = jax.random.PRNGKey(0)
    kx, kp = jax.random.split(key)
    x = jax.random.normal(kx, (N, in_channels, H, W), jnp.float32)
    params = init_group_params(kp, in_channels, out_channels, kernel_size)

    out = group_forward(x, params,
                        in_channels=in_channels, out_channels=out_channels,
                        kernel_size=kernel_size, stride=stride,
                        padding=padding)
    out = jax.block_until_ready(out)

    ref = _ref_group(x, params, in_channels, out_channels, stride, padding)
    assert out.shape == (N, out_channels, H, W), out.shape
    assert jnp.allclose(out, ref, atol=1e-4, rtol=1e-4), \
        float(jnp.max(jnp.abs(out - ref)))

    print("KERNEL_OK")
</pallas_src>

<mosaic_0001>
module attributes {stable_mosaic.version = 11 : i64} {
  func.func @_group_fused_kernel(%arg0: i32, %arg1: memref<1x4x512xf32, #tpu.memory_space<vmem>>, %arg2: memref<1x512xf32, #tpu.memory_space<vmem>>, %arg3: memref<4x4xf32, #tpu.memory_space<vmem>>, %arg4: memref<4x4xf32, #tpu.memory_space<vmem>>, %arg5: memref<4x1xf32, #tpu.memory_space<vmem>>, %arg6: memref<4x1xf32, #tpu.memory_space<vmem>>, %arg7: memref<9x8x4xf32, #tpu.memory_space<vmem>>, %arg8: memref<9x8x4xf32, #tpu.memory_space<vmem>>, %arg9: memref<8x1xf32, #tpu.memory_space<vmem>>, %arg10: memref<8x1xf32, #tpu.memory_space<vmem>>, %arg11: memref<1x8x384xf32, #tpu.memory_space<vmem>>, %arg12: memref<4x512xf32, #tpu.memory_space<vmem>>) attributes {dimension_semantics = [#tpu.dimension_semantics<parallel>], iteration_bounds = array<i64: 2>, scalar_prefetch = 0 : i64, scratch_operands = 1 : i64, tpu.core_type = #tpu.core_type<tc>, window_params = [{transform_indices = @transform_0, window_bounds = array<i64: 1, 4, 512>}, {pipeline_mode = #tpu.pipeline_mode<synchronous>, transform_indices = @transform_1, window_bounds = array<i64: 1, 512>}, {pipeline_mode = #tpu.pipeline_mode<synchronous>, transform_indices = @transform_2, window_bounds = array<i64: 4, 4>}, {pipeline_mode = #tpu.pipeline_mode<synchronous>, transform_indices = @transform_3, window_bounds = array<i64: 4, 4>}, {pipeline_mode = #tpu.pipeline_mode<synchronous>, transform_indices = @transform_4, window_bounds = array<i64: 4, 1>}, {pipeline_mode = #tpu.pipeline_mode<synchronous>, transform_indices = @transform_5, window_bounds = array<i64: 4, 1>}, {pipeline_mode = #tpu.pipeline_mode<synchronous>, transform_indices = @transform_6, window_bounds = array<i64: 9, 8, 4>}, {pipeline_mode = #tpu.pipeline_mode<synchronous>, transform_indices = @transform_7, window_bounds = array<i64: 9, 8, 4>}, {pipeline_mode = #tpu.pipeline_mode<synchronous>, transform_indices = @transform_8, window_bounds = array<i64: 8, 1>}, {pipeline_mode = #tpu.pipeline_mode<synchronous>, transform_indices = @transform_9, window_bounds = array<i64: 8, 1>}, {transform_indices = @transform_10, window_bounds = array<i64: 1, 8, 384>}]} {
    %c0 = arith.constant 0 : index
    %c0_0 = arith.constant 0 : index
    %c0_1 = arith.constant 0 : index
    %0 = vector.load %arg1[%c0, %c0_0, %c0_1] : memref<1x4x512xf32, #tpu.memory_space<vmem>>, vector<1x4x512xf32>
    %1 = vector.shape_cast %0 : vector<1x4x512xf32> to vector<4x512xf32>
    %c0_2 = arith.constant 0 : index
    %c0_3 = arith.constant 0 : index
    %2 = vector.load %arg3[%c0_2, %c0_3] : memref<4x4xf32, #tpu.memory_space<vmem>>, vector<4x4xf32>
    %cst = arith.constant dense<0.000000e+00> : vector<4x512xf32>
    %3 = tpu.matmul %2, %1, %cst {dimension_numbers = #tpu.dot_dimension_numbers<[1], [0], [0], [1], [0, 0, 1, 1], [], []>} : vector<4x4xf32>, vector<4x512xf32>, vector<4x512xf32> -> vector<4x512xf32>
    %c0_4 = arith.constant 0 : index
    %c0_5 = arith.constant 0 : index
    %4 = vector.load %arg4[%c0_4, %c0_5] : memref<4x4xf32, #tpu.memory_space<vmem>>, vector<4x4xf32>
    %cst_6 = arith.constant dense<0.000000e+00> : vector<4x512xf32>
    %5 = tpu.matmul %4, %1, %cst_6 {dimension_numbers = #tpu.dot_dimension_numbers<[1], [0], [0], [1], [0, 0, 1, 1], [], []>} : vector<4x4xf32>, vector<4x512xf32>, vector<4x512xf32> -> vector<4x512xf32>
    %c0_7 = arith.constant 0 : index
    %c0_8 = arith.constant 0 : index
    %6 = vector.load %arg5[%c0_7, %c0_8] : memref<4x1xf32, #tpu.memory_space<vmem>>, vector<4x1xf32>
    %7 = vector.broadcast %6 : vector<4x1xf32> to vector<4x512xf32>
    %8 = arith.addf %3, %7 : vector<4x512xf32>
    %c0_9 = arith.constant 0 : index
    %c0_10 = arith.constant 0 : index
    %9 = vector.load %arg6[%c0_9, %c0_10] : memref<4x1xf32, #tpu.memory_space<vmem>>, vector<4x1xf32>
    %10 = vector.broadcast %9 : vector<4x1xf32> to vector<4x512xf32>
    %11 = arith.addf %5, %10 : vector<4x512xf32>
    %12 = arith.maximumf %8, %11 : vector<4x512xf32>
    %c0_11 = arith.constant 0 : index
    %c0_12 = arith.constant 0 : index
    %13 = vector.load %arg2[%c0_11, %c0_12] : memref<1x512xf32, #tpu.memory_space<vmem>>, vector<1x512xf32>
    %14 = vector.broadcast %13 : vector<1x512xf32> to vector<4x512xf32>
    %15 = arith.mulf %12, %14 : vector<4x512xf32>
    %c0_13 = arith.constant 0 : index
    %c0_14 = arith.constant 0 : index
    %16 = vector.load %arg12[%c0_13, %c0_14] : memref<4x512xf32, #tpu.memory_space<vmem>>, vector<4x512xf32>
    tpu.vector_store %arg12[%c0_13, %c0_14], %15 {strides = array<i32>} : memref<4x512xf32, #tpu.memory_space<vmem>>, vector<4x512xf32>,
    %cst_15 = arith.constant 0.000000e+00 : f32
    %17 = vector.broadcast %cst_15 : f32 to vector<8x384xf32>
    %cst_16 = arith.constant 0.000000e+00 : f32
    %18 = vector.broadcast %cst_16 : f32 to vector<8x384xf32>
    %c0_17 = arith.constant 0 : index
    %c0_18 = arith.constant 0 : index
    %19 = vector.load %arg12[%c0_17, %c0_18] : memref<4x512xf32, #tpu.memory_space<vmem>>, vector<4x384xf32>
    %c0_19 = arith.constant 0 : index
    %c0_20 = arith.constant 0 : index
    %c0_21 = arith.constant 0 : index
    %20 = vector.load %arg7[%c0_19, %c0_20, %c0_21] : memref<9x8x4xf32, #tpu.memory_space<vmem>>, vector<1x8x4xf32>
    %21 = vector.shape_cast %20 : vector<1x8x4xf32> to vector<8x4xf32>
    %cst_22 = arith.constant dense<0.000000e+00> : vector<8x384xf32>
    %22 = tpu.matmul %21, %19, %cst_22 {dimension_numbers = #tpu.dot_dimension_numbers<[1], [0], [0], [1], [0, 0, 1, 1], [], []>} : vector<8x4xf32>, vector<4x384xf32>, vector<8x384xf32> -> vector<8x384xf32>
    %23 = arith.addf %17, %22 : vector<8x384xf32>
    %c0_23 = arith.constant 0 : index
    %c0_24 = arith.constant 0 : index
    %c0_25 = arith.constant 0 : index
    %24 = vector.load %arg8[%c0_23, %c0_24, %c0_25] : memref<9x8x4xf32, #tpu.memory_space<vmem>>, vector<1x8x4xf32>
    %25 = vector.shape_cast %24 : vector<1x8x4xf32> to vector<8x4xf32>
    %cst_26 = arith.constant dense<0.000000e+00> : vector<8x384xf32>
    %26 = tpu.matmul %25, %19, %cst_26 {dimension_numbers = #tpu.dot_dimension_numbers<[1], [0], [0], [1], [0, 0, 1, 1], [], []>} : vector<8x4xf32>, vector<4x384xf32>, vector<8x384xf32> -> vector<8x384xf32>
    %27 = arith.addf %18, %26 : vector<8x384xf32>
    %c0_27 = arith.constant 0 : index
    %c1 = arith.constant 1 : index
    %28 = vector.load %arg12[%c0_27, %c1] : memref<4x512xf32, #tpu.memory_space<vmem>>, vector<4x384xf32>
    %c1_28 = arith.constant 1 : index
    %c0_29 = arith.constant 0 : index
    %c0_30 = arith.constant 0 : index
    %29 = vector.load %arg7[%c1_28, %c0_29, %c0_30] : memref<9x8x4xf32, #tpu.memory_space<vmem>>, vector<1x8x4xf32>
    %30 = vector.shape_cast %29 : vector<1x8x4xf32> to vector<8x4xf32>
    %cst_31 = arith.constant dense<0.000000e+00> : vector<8x384xf32>
    %31 = tpu.matmul %30, %28, %cst_31 {dimension_numbers = #tpu.dot_dimension_numbers<[1], [0], [0], [1], [0, 0, 1, 1], [], []>} : vector<8x4xf32>, vector<4x384xf32>, vector<8x384xf32> -> vector<8x384xf32>
    %32 = arith.addf %23, %31 : vector<8x384xf32>
    %c1_32 = arith.constant 1 : index
    %c0_33 = arith.constant 0 : index
    %c0_34 = arith.constant 0 : index
    %33 = vector.load %arg8[%c1_32, %c0_33, %c0_34] : memref<9x8x4xf32, #tpu.memory_space<vmem>>, vector<1x8x4xf32>
    %34 = vector.shape_cast %33 : vector<1x8x4xf32> to vector<8x4xf32>
    %cst_35 = arith.constant dense<0.000000e+00> : vector<8x384xf32>
    %35 = tpu.matmul %34, %28, %cst_35 {dimension_numbers = #tpu.dot_dimension_numbers<[1], [0], [0], [1], [0, 0, 1, 1], [], []>} : vector<8x4xf32>, vector<4x384xf32>, vector<8x384xf32> -> vector<8x384xf32>
    %36 = arith.addf %27, %35 : vector<8x384xf32>
    %c0_36 = arith.constant 0 : index
    %c2 = arith.constant 2 : index
    %37 = vector.load %arg12[%c0_36, %c2] : memref<4x512xf32, #tpu.memory_space<vmem>>, vector<4x384xf32>
    %c2_37 = arith.constant 2 : index
    %c0_38 = arith.constant 0 : index
    %c0_39 = arith.constant 0 : index
    %38 = vector.load %arg7[%c2_37, %c0_38, %c0_39] : memref<9x8x4xf32, #tpu.memory_space<vmem>>, vector<1x8x4xf32>
    %39 = vector.shape_cast %38 : vector<1x8x4xf32> to vector<8x4xf32>
    %cst_40 = arith.constant dense<0.000000e+00> : vector<8x384xf32>
    %40 = tpu.matmul %39, %37, %cst_40 {dimension_numbers = #tpu.dot_dimension_numbers<[1], [0], [0], [1], [0, 0, 1, 1], [], []>} : vector<8x4xf32>, vector<4x384xf32>, vector<8x384xf32> -> vector<8x384xf32>
    %41 = arith.addf %32, %40 : vector<8x384xf32>
    %c2_41 = arith.constant 2 : index
    %c0_42 = arith.constant 0 : index
    %c0_43 = arith.constant 0 : index
    %42 = vector.load %arg8[%c2_41, %c0_42, %c0_43] : memref<9x8x4xf32, #tpu.memory_space<vmem>>, vector<1x8x4xf32>
    %43 = vector.shape_cast %42 : vector<1x8x4xf32> to vector<8x4xf32>
    %cst_44 = arith.constant dense<0.000000e+00> : vector<8x384xf32>
    %44 = tpu.matmul %43, %37, %cst_44 {dimension_numbers = #tpu.dot_dimension_numbers<[1], [0], [0], [1], [0, 0, 1, 1], [], []>} : vector<8x4xf32>, vector<4x384xf32>, vector<8x384xf32> -> vector<8x384xf32>
    %45 = arith.addf %36, %44 : vector<8x384xf32>
    %c0_45 = arith.constant 0 : index
    %c18 = arith.constant 18 : index
    %46 = vector.load %arg12[%c0_45, %c18] : memref<4x512xf32, #tpu.memory_space<vmem>>, vector<4x384xf32>
    %c3 = arith.constant 3 : index
    %c0_46 = arith.constant 0 : index
    %c0_47 = arith.constant 0 : index
    %47 = vector.load %arg7[%c3, %c0_46, %c0_47] : memref<9x8x4xf32, #tpu.memory_space<vmem>>, vector<1x8x4xf32>
    %48 = vector.shape_cast %47 : vector<1x8x4xf32> to vector<8x4xf32>
    %cst_48 = arith.constant dense<0.000000e+00> : vector<8x384xf32>
    %49 = tpu.matmul %48, %46, %cst_48 {dimension_numbers = #tpu.dot_dimension_numbers<[1], [0], [0], [1], [0, 0, 1, 1], [], []>} : vector<8x4xf32>, vector<4x384xf32>, vector<8x384xf32> -> vector<8x384xf32>
    %50 = arith.addf %41, %49 : vector<8x384xf32>
    %c3_49 = arith.constant 3 : index
    %c0_50 = arith.constant 0 : index
    %c0_51 = arith.constant 0 : index
    %51 = vector.load %arg8[%c3_49, %c0_50, %c0_51] : memref<9x8x4xf32, #tpu.memory_space<vmem>>, vector<1x8x4xf32>
    %52 = vector.shape_cast %51 : vector<1x8x4xf32> to vector<8x4xf32>
    %cst_52 = arith.constant dense<0.000000e+00> : vector<8x384xf32>
    %53 = tpu.matmul %52, %46, %cst_52 {dimension_numbers = #tpu.dot_dimension_numbers<[1], [0], [0], [1], [0, 0, 1, 1], [], []>} : vector<8x4xf32>, vector<4x384xf32>, vector<8x384xf32> -> vector<8x384xf32>
    %54 = arith.addf %45, %53 : vector<8x384xf32>
    %c0_53 = arith.constant 0 : index
    %c19 = arith.constant 19 : index
    %55 = vector.load %arg12[%c0_53, %c19] : memref<4x512xf32, #tpu.memory_space<vmem>>, vector<4x384xf32>
    %c4 = arith.constant 4 : index
    %c0_54 = arith.constant 0 : index
    %c0_55 = arith.constant 0 : index
    %56 = vector.load %arg7[%c4, %c0_54, %c0_55] : memref<9x8x4xf32, #tpu.memory_space<vmem>>, vector<1x8x4xf32>
    %57 = vector.shape_cast %56 : vector<1x8x4xf32> to vector<8x4xf32>
    %cst_56 = arith.constant dense<0.000000e+00> : vector<8x384xf32>
    %58 = tpu.matmul %57, %55, %cst_56 {dimension_numbers = #tpu.dot_dimension_numbers<[1], [0], [0], [1], [0, 0, 1, 1], [], []>} : vector<8x4xf32>, vector<4x384xf32>, vector<8x384xf32> -> vector<8x384xf32>
    %59 = arith.addf %50, %58 : vector<8x384xf32>
    %c4_57 = arith.constant 4 : index
    %c0_58 = arith.constant 0 : index
    %c0_59 = arith.constant 0 : index
    %60 = vector.load %arg8[%c4_57, %c0_58, %c0_59] : memref<9x8x4xf32, #tpu.memory_space<vmem>>, vector<1x8x4xf32>
    %61 = vector.shape_cast %60 : vector<1x8x4xf32> to vector<8x4xf32>
    %cst_60 = arith.constant dense<0.000000e+00> : vector<8x384xf32>
    %62 = tpu.matmul %61, %55, %cst_60 {dimension_numbers = #tpu.dot_dimension_numbers<[1], [0], [0], [1], [0, 0, 1, 1], [], []>} : vector<8x4xf32>, vector<4x384xf32>, vector<8x384xf32> -> vector<8x384xf32>
    %63 = arith.addf %54, %62 : vector<8x384xf32>
    %c0_61 = arith.constant 0 : index
    %c20 = arith.constant 20 : index
    %64 = vector.load %arg12[%c0_61, %c20] : memref<4x512xf32, #tpu.memory_space<vmem>>, vector<4x384xf32>
    %c5 = arith.constant 5 : index
    %c0_62 = arith.constant 0 : index
    %c0_63 = arith.constant 0 : index
    %65 = vector.load %arg7[%c5, %c0_62, %c0_63] : memref<9x8x4xf32, #tpu.memory_space<vmem>>, vector<1x8x4xf32>
    %66 = vector.shape_cast %65 : vector<1x8x4xf32> to vector<8x4xf32>
    %cst_64 = arith.constant dense<0.000000e+00> : vector<8x384xf32>
    %67 = tpu.matmul %66, %64, %cst_64 {dimension_numbers = #tpu.dot_dimension_numbers<[1], [0], [0], [1], [0, 0, 1, 1], [], []>} : vector<8x4xf32>, vector<4x384xf32>, vector<8x384xf32> -> vector<8x384xf32>
    %68 = arith.addf %59, %67 : vector<8x384xf32>
    %c5_65 = arith.constant 5 : index
    %c0_66 = arith.constant 0 : index
    %c0_67 = arith.constant 0 : index
    %69 = vector.load %arg8[%c5_65, %c0_66, %c0_67] : memref<9x8x4xf32, #tpu.memory_space<vmem>>, vector<1x8x4xf32>
    %70 = vector.shape_cast %69 : vector<1x8x4xf32> to vector<8x4xf32>
    %cst_68 = arith.constant dense<0.000000e+00> : vector<8x384xf32>
    %71 = tpu.matmul %70, %64, %cst_68 {dimension_numbers = #tpu.dot_dimension_numbers<[1], [0], [0], [1], [0, 0, 1, 1], [], []>} : vector<8x4xf32>, vector<4x384xf32>, vector<8x384xf32> -> vector<8x384xf32>
    %72 = arith.addf %63, %71 : vector<8x384xf32>
    %c0_69 = arith.constant 0 : index
    %c36 = arith.constant 36 : index
    %73 = vector.load %arg12[%c0_69, %c36] : memref<4x512xf32, #tpu.memory_space<vmem>>, vector<4x384xf32>
    %c6 = arith.constant 6 : index
    %c0_70 = arith.constant 0 : index
    %c0_71 = arith.constant 0 : index
    %74 = vector.load %arg7[%c6, %c0_70, %c0_71] : memref<9x8x4xf32, #tpu.memory_space<vmem>>, vector<1x8x4xf32>
    %75 = vector.shape_cast %74 : vector<1x8x4xf32> to vector<8x4xf32>
    %cst_72 = arith.constant dense<0.000000e+00> : vector<8x384xf32>
    %76 = tpu.matmul %75, %73, %cst_72 {dimension_numbers = #tpu.dot_dimension_numbers<[1], [0], [0], [1], [0, 0, 1, 1], [], []>} : vector<8x4xf32>, vector<4x384xf32>, vector<8x384xf32> -> vector<8x384xf32>
    %77 = arith.addf %68, %76 : vector<8x384xf32>
    %c6_73 = arith.constant 6 : index
    %c0_74 = arith.constant 0 : index
    %c0_75 = arith.constant 0 : index
    %78 = vector.load %arg8[%c6_73, %c0_74, %c0_75] : memref<9x8x4xf32, #tpu.memory_space<vmem>>, vector<1x8x4xf32>
    %79 = vector.shape_cast %78 : vector<1x8x4xf32> to vector<8x4xf32>
    %cst_76 = arith.constant dense<0.000000e+00> : vector<8x384xf32>
    %80 = tpu.matmul %79, %73, %cst_76 {dimension_numbers = #tpu.dot_dimension_numbers<[1], [0], [0], [1], [0, 0, 1, 1], [], []>} : vector<8x4xf32>, vector<4x384xf32>, vector<8x384xf32> -> vector<8x384xf32>
    %81 = arith.addf %72, %80 : vector<8x384xf32>
    %c0_77 = arith.constant 0 : index
    %c37 = arith.constant 37 : index
    %82 = vector.load %arg12[%c0_77, %c37] : memref<4x512xf32, #tpu.memory_space<vmem>>, vector<4x384xf32>
    %c7 = arith.constant 7 : index
    %c0_78 = arith.constant 0 : index
    %c0_79 = arith.constant 0 : index
    %83 = vector.load %arg7[%c7, %c0_78, %c0_79] : memref<9x8x4xf32, #tpu.memory_space<vmem>>, vector<1x8x4xf32>
    %84 = vector.shape_cast %83 : vector<1x8x4xf32> to vector<8x4xf32>
    %cst_80 = arith.constant dense<0.000000e+00> : vector<8x384xf32>
    %85 = tpu.matmul %84, %82, %cst_80 {dimension_numbers = #tpu.dot_dimension_numbers<[1], [0], [0], [1], [0, 0, 1, 1], [], []>} : vector<8x4xf32>, vector<4x384xf32>, vector<8x384xf32> -> vector<8x384xf32>
    %86 = arith.addf %77, %85 : vector<8x384xf32>
    %c7_81 = arith.constant 7 : index
    %c0_82 = arith.constant 0 : index
    %c0_83 = arith.constant 0 : index
    %87 = vector.load %arg8[%c7_81, %c0_82, %c0_83] : memref<9x8x4xf32, #tpu.memory_space<vmem>>, vector<1x8x4xf32>
    %88 = vector.shape_cast %87 : vector<1x8x4xf32> to vector<8x4xf32>
    %cst_84 = arith.constant dense<0.000000e+00> : vector<8x384xf32>
    %89 = tpu.matmul %88, %82, %cst_84 {dimension_numbers = #tpu.dot_dimension_numbers<[1], [0], [0], [1], [0, 0, 1, 1], [], []>} : vector<8x4xf32>, vector<4x384xf32>, vector<8x384xf32> -> vector<8x384xf32>
    %90 = arith.addf %81, %89 : vector<8x384xf32>
    %c0_85 = arith.constant 0 : index
    %c38 = arith.constant 38 : index
    %91 = vector.load %arg12[%c0_85, %c38] : memref<4x512xf32, #tpu.memory_space<vmem>>, vector<4x384xf32>
    %c8 = arith.constant 8 : index
    %c0_86 = arith.constant 0 : index
    %c0_87 = arith.constant 0 : index
    %92 = vector.load %arg7[%c8, %c0_86, %c0_87] : memref<9x8x4xf32, #tpu.memory_space<vmem>>, vector<1x8x4xf32>
    %93 = vector.shape_cast %92 : vector<1x8x4xf32> to vector<8x4xf32>
    %cst_88 = arith.constant dense<0.000000e+00> : vector<8x384xf32>
    %94 = tpu.matmul %93, %91, %cst_88 {dimension_numbers = #tpu.dot_dimension_numbers<[1], [0], [0], [1], [0, 0, 1, 1], [], []>} : vector<8x4xf32>, vector<4x384xf32>, vector<8x384xf32> -> vector<8x384xf32>
    %95 = arith.addf %86, %94 : vector<8x384xf32>
    %c8_89 = arith.constant 8 : index
    %c0_90 = arith.constant 0 : index
    %c0_91 = arith.constant 0 : index
    %96 = vector.load %arg8[%c8_89, %c0_90, %c0_91] : memref<9x8x4xf32, #tpu.memory_space<vmem>>, vector<1x8x4xf32>
    %97 = vector.shape_cast %96 : vector<1x8x4xf32> to vector<8x4xf32>
    %cst_92 = arith.constant dense<0.000000e+00> : vector<8x384xf32>
    %98 = tpu.matmul %97, %91, %cst_92 {dimension_numbers = #tpu.dot_dimension_numbers<[1], [0], [0], [1], [0, 0, 1, 1], [], []>} : vector<8x4xf32>, vector<4x384xf32>, vector<8x384xf32> -> vector<8x384xf32>
    %99 = arith.addf %90, %98 : vector<8x384xf32>
    %c0_93 = arith.constant 0 : index
    %c0_94 = arith.constant 0 : index
    %100 = vector.load %arg9[%c0_93, %c0_94] : memref<8x1xf32, #tpu.memory_space<vmem>>, vector<8x1xf32>
    %101 = vector.broadcast %100 : vector<8x1xf32> to vector<8x384xf32>
    %102 = arith.addf %95, %101 : vector<8x384xf32>
    %c0_95 = arith.constant 0 : index
    %c0_96 = arith.constant 0 : index
    %103 = vector.load %arg10[%c0_95, %c0_96] : memref<8x1xf32, #tpu.memory_space<vmem>>, vector<8x1xf32>
    %104 = vector.broadcast %103 : vector<8x1xf32> to vector<8x384xf32>
    %105 = arith.addf %99, %104 : vector<8x384xf32>
    %106 = arith.maximumf %102, %105 : vector<8x384xf32>
    %c0_97 = arith.constant 0 : index
    %c0_98 = arith.constant 0 : index
    %c0_99 = arith.constant 0 : index
    %107 = vector.load %arg11[%c0_97, %c0_98, %c0_99] : memref<1x8x384xf32, #tpu.memory_space<vmem>>, vector<1x8x384xf32>
    %108 = vector.shape_cast %107 : vector<1x8x384xf32> to vector<8x384xf32>
    %109 = vector.shape_cast %106 : vector<8x384xf32> to vector<1x8x384xf32>
    tpu.vector_store %arg11[%c0_97, %c0_98, %c0_99], %109 {strides = array<i32>} : memref<1x8x384xf32, #tpu.memory_space<vmem>>, vector<1x8x384xf32>,
    return
  }
  func.func @transform_0(%arg0: i32) -> (i32, i32, i32) {
    %c0_i32 = arith.constant 0 : i32
    %c0_i32_0 = arith.constant 0 : i32
    %c0_i32_1 = arith.constant 0 : i32
    return %arg0, %c0_i32, %c0_i32_0 : i32, i32, i32
  }
  func.func @transform_1(%arg0: i32) -> (i32, i32) {
    %c0_i32 = arith.constant 0 : i32
    %c0_i32_0 = arith.constant 0 : i32
    %c0_i32_1 = arith.constant 0 : i32
    return %c0_i32, %c0_i32_0 : i32, i32
  }
  func.func @transform_2(%arg0: i32) -> (i32, i32) {
    %c0_i32 = arith.constant 0 : i32
    %c0_i32_0 = arith.constant 0 : i32
    %c0_i32_1 = arith.constant 0 : i32
    return %c0_i32, %c0_i32_0 : i32, i32
  }
  func.func @transform_3(%arg0: i32) -> (i32, i32) {
    %c0_i32 = arith.constant 0 : i32
    %c0_i32_0 = arith.constant 0 : i32
    %c0_i32_1 = arith.constant 0 : i32
    return %c0_i32, %c0_i32_0 : i32, i32
  }
  func.func @transform_4(%arg0: i32) -> (i32, i32) {
    %c0_i32 = arith.constant 0 : i32
    %c0_i32_0 = arith.constant 0 : i32
    %c0_i32_1 = arith.constant 0 : i32
    return %c0_i32, %c0_i32_0 : i32, i32
  }
  func.func @transform_5(%arg0: i32) -> (i32, i32) {
    %c0_i32 = arith.constant 0 : i32
    %c0_i32_0 = arith.constant 0 : i32
    %c0_i32_1 = arith.constant 0 : i32
    return %c0_i32, %c0_i32_0 : i32, i32
  }
  func.func @transform_6(%arg0: i32) -> (i32, i32, i32) {
    %c0_i32 = arith.constant 0 : i32
    %c0_i32_0 = arith.constant 0 : i32
    %c0_i32_1 = arith.constant 0 : i32
    %c0_i32_2 = arith.constant 0 : i32
    return %c0_i32, %c0_i32_0, %c0_i32_1 : i32, i32, i32
  }
  func.func @transform_7(%arg0: i32) -> (i32, i32, i32) {
    %c0_i32 = arith.constant 0 : i32
    %c0_i32_0 = arith.constant 0 : i32
    %c0_i32_1 = arith.constant 0 : i32
    %c0_i32_2 = arith.constant 0 : i32
    return %c0_i32, %c0_i32_0, %c0_i32_1 : i32, i32, i32
  }
  func.func @transform_8(%arg0: i32) -> (i32, i32) {
    %c0_i32 = arith.constant 0 : i32
    %c0_i32_0 = arith.constant 0 : i32
    %c0_i32_1 = arith.constant 0 : i32
    return %c0_i32, %c0_i32_0 : i32, i32
  }
  func.func @transform_9(%arg0: i32) -> (i32, i32) {
    %c0_i32 = arith.constant 0 : i32
    %c0_i32_0 = arith.constant 0 : i32
    %c0_i32_1 = arith.constant 0 : i32
    return %c0_i32, %c0_i32_0 : i32, i32
  }
  func.func @transform_10(%arg0: i32) -> (i32, i32, i32) {
    %c0_i32 = arith.constant 0 : i32
    %c0_i32_0 = arith.constant 0 : i32
    %c0_i32_1 = arith.constant 0 : i32
    return %arg0, %c0_i32, %c0_i32_0 : i32, i32, i32
  }
}

</mosaic_0001>

<bundles_post_ra>
// kernel: group_forward.1
= control target key start
LH: loop header
LB: loop body
LE: loop exit
PB: predicated region body
PF: predicated region fallthrough
CT: control target
= control target key end

     0   :  { %s2590_s13 = smov 0   ;;  %s2982_s0 = inlined_call_operand.vmem [shape: f32[2,4,512], index: 0, kind: input, shape index: {}]   ;;  %s2983_s1 = inlined_call_operand.vmem [shape: f32[1,512], index: 1, kind: input, shape index: {}]   ;;  %s2984_s2 = inlined_call_operand.vmem [shape: f32[4,4], index: 2, kind: input, shape index: {}]   ;;  %s2985_s3 = inlined_call_operand.vmem [shape: f32[4,4], index: 3, kind: input, shape index: {}]   ;;  %s2986_s4 = inlined_call_operand.vmem [shape: f32[4,1], index: 4, kind: input, shape index: {}]   ;;  %s2987_s5 = inlined_call_operand.vmem [shape: f32[4,1], index: 5, kind: input, shape index: {}]   ;;  %s2988_s6 = inlined_call_operand.vmem [shape: f32[9,8,4], index: 6, kind: input, shape index: {}]   ;;  %s2989_s7 = inlined_call_operand.vmem [shape: f32[9,8,4], index: 7, kind: input, shape index: {}]   ;;  %s2990_s8 = inlined_call_operand.vmem [shape: f32[8,1], index: 8, kind: input, shape index: {}]   ;;  %s2991_s9 = inlined_call_operand.vmem [shape: f32[8,1], index: 9, kind: input, shape index: {}]   ;;  %s2992_s10 = inlined_call_operand.vmem [shape: f32[2,8,384], index: 10, kind: output, shape index: {}]  }
   0x1 LB: > { %s2347_s14 = sadd.s32 4294967295, %s2524_s13   ;;  %p2351_p0 = scmp.ge.s32.totalorder %s2524_s13, 1  ;;  %s2524_s13 = sphi %s2590_s13, %s20_s13  }
   0x2   : > { %p312_p1 = scmp.lt.s32.totalorder %s2524_s13, 3 }
   0x4   : > { %p313_p2 = pnand %p2351_p0, %p312_p1 }
   0x5   : > { %p350_p3 = scmp.lt.s32.totalorder (!%p313_p2), %s2347_s14, 1  ;;  %s2527_s29 = smov (!%p313_p2), 127  }
   0x6   : > { %316 = sbr.rel (%p313_p2) target bundleno = 612 (0x264), region = 60  ;;  %s2528_s30 = smov (!%p313_p2), 126  }
   0x7   : > { %s2529_s11 = smov (!%p313_p2), 110   ;;  %s2530_s12 = smov (!%p313_p2), 109  }
   0x8   : > { %s2531_s15 = smov (!%p313_p2), 108   ;;  %s2533_s23 = smov (!%p313_p2), 91  }
   0x9   : > { %s2534_s28 = smov (!%p313_p2), 90  }
   0xb   : > { %v2526_v0 = vmov 0   ;;  %v364_v1 = vld [vmem:[%s2986_s4] sm:$0xf]  ;;  %s2994_s14 = smov (!%p350_p3, %s2347_s14), 1  ;;  %vm383_vm0 = vcmask 1043456   ;;  %vm379_vm1 = vcmask 31744  }
   0xc   : > { %2516 = vset.pattern.permute.xlu0 %v2526_v0  ;;  %2517 = vset.pattern.permute.xlu1 %v2526_v0  ;;  %s2497_s17 = sshll.u32 %s2994_s14, 4  ;;  %v472_v4 = vld [vmem:[%s2987_s5] sm:$0xf]  ;;  %vm631_vm2 = vcmask 1039360   ;;  %vm966_vm3 = vcmask 1031168   ;;  %vm1155_vm4 = vcmask 900096  }
   0xd   : > { %367 = vperm.xlu0 %2516, %v364_v1   ;;  %s354_s20 = scalar_lea.vmem %s2982_s0, %s2497_s17  ;;  %v362_v5 = vld [vmem:[%s2984_s2] sm:$0xf]  ;;  %vm1344_vm5 = vcmask 891904   ;;  %vm1533_vm6 = vcmask 883712   ;;  %vm1722_vm7 = vcmask 752640   ;;  %vm1911_vm8 = vcmask 744448  }
   0xe   : > { %v360_v2 = vld [vmem:[%s354_s20] sm:$0xff]  ;;  %v361_v3 = vld [vmem:[%s354_s20 + $0x8] sm:$0xff]  ;;  %s2532_s20 = smov 92   ;;  %vm2100_vm9 = vcmask 736256  }
   0xf   : > { %372 = vst [vmem:[#allocation1] ss:$2 sm:$0xff] %v360_v2  ;;  %v363_v10 = vld [vmem:[%s2985_s3] sm:$0xf] }
  0x10   : > { %374 = vst [vmem:[#allocation1 + $0x10] ss:$2 sm:$0xff] %v361_v3  ;;  %v580_v20 = vld [vmem:[%s2983_s1] sm:$0xf] }
  0x11   : > { %v583_v28 = vperm.slane %v580_v20, 1  ;;  %v582_v30 = vperm.slane %v580_v20, 0  ;;  %v585_v41 = vperm.slane %v580_v20, 3  ;;  %v584_v44 = vperm.slane %v580_v20, 2 }
  0x15   : > { %475 = vperm.xlu0 %2516, %v472_v4  }
  0x16   : > { %v375_v6 = vld.sshfl [vmem:[#allocation1] sm:$0xff pattern:$0x75316420]  ;;  %v376_v7 = vld.sshfl [vmem:[#allocation1 + $0x8] sm:$0xff pattern:$0x75316420] }
  0x17   : > { %2355 = vmatpush.msk.msra.mxu0 %vm383_vm0, %v375_v6  ;;  %2357 = vmatpush.msk.msra.mxu1 %vm383_vm0, %v376_v7  ;;  %478 = vst [vmem:[#allocation1] ss:$2 sm:$0xff] %v360_v2  ;;  %v377_v8 = vld.sshfl [vmem:[#allocation1 + $0x10] sm:$0xff pattern:$0x75316420] }
  0x18   : > { %2359 = vmatpush.msk.msra.mxu2 %vm383_vm0, %v377_v8  ;;  %v378_v9 = vld.sshfl [vmem:[#allocation1 + $0x18] sm:$0xff pattern:$0x75316420]  ;;  %2356 = vmatmul.msk.f32.vlgmr.msra.gmra.mxu0 %vm379_vm1, %v362_v5 }
  0x19   : > { %2361 = vmatpush.msk.msra.mxu3 %vm383_vm0, %v378_v9  ;;  %480 = vst [vmem:[#allocation1 + $0x10] ss:$2 sm:$0xff] %v361_v3  ;;  %2358 = vmatmul.msk.f32.vlgmr.msra.gmra.mxu1 %vm379_vm1, %v362_v5 }
  0x1a   : > { %2360 = vmatmul.msk.f32.vlgmr.msra.gmra.mxu2 %vm379_vm1, %v362_v5  ;;  %2362 = vmatmul.msk.f32.vlgmr.msra.gmra.mxu3 %vm379_vm1, %v362_v5 }
  0x1e   : > { %v481_v11 = vld.sshfl [vmem:[#allocation1] sm:$0xff pattern:$0x75316420]  ;;  %v482_v12 = vld.sshfl [vmem:[#allocation1 + $0x8] sm:$0xff pattern:$0x75316420] }
  0x1f   : > { %2363 = vmatpush.msk.msrb.mxu0 %vm383_vm0, %v481_v11  ;;  %2365 = vmatpush.msk.msrb.mxu1 %vm383_vm0, %v482_v12 }
  0x20   : > { %v483_v13 = vld.sshfl [vmem:[#allocation1 + $0x10] sm:$0xff pattern:$0x75316420]  ;;  %v484_v14 = vld.sshfl [vmem:[#allocation1 + $0x18] sm:$0xff pattern:$0x75316420]  ;;  %2364 = vmatmul.msk.f32.vlgmr.msrb.gmra.mxu0 %vm379_vm1, %v363_v10 }
  0x21   : > { %2367 = vmatpush.msk.msrb.mxu2 %vm383_vm0, %v483_v13  ;;  %2369 = vmatpush.msk.msrb.mxu3 %vm383_vm0, %v484_v14 }
  0x22   : > { %2366 = vmatmul.msk.f32.vlgmr.msrb.gmra.mxu1 %vm379_vm1, %v363_v10  ;;  %2368 = vmatmul.msk.f32.vlgmr.msrb.gmra.mxu2 %vm379_vm1, %v363_v10 }
  0x23   : > { %2370 = vmatmul.msk.f32.vlgmr.msrb.gmra.mxu3 %vm379_vm1, %v363_v10 }
  0x7f   : > { %v368_v15 = vpop.permute.xlu0 %367 }
  0x87   : > { %v476_v21 = vpop.permute.xlu0 %475 }
  0x95   : > { %v409_v16 = vpop.f32.mrf.mxu0 }
  0x96   : > { %v429_v17 = vpop.f32.mrf.mxu1  ;;  %v410_v25 = vadd.f32 %v409_v16, %v368_v15 }
  0x97   : > { %v430_v26 = vadd.f32 %v429_v17, %v368_v15 }
  0x9d   : > { %v449_v18 = vpop.f32.mrf.mxu2  ;;  %v469_v19 = vpop.f32.mrf.mxu3 }
  0x9e   : > { %v513_v22 = vpop.f32.mrf.mxu0  ;;  %v450_v38 = vadd.f32 %v449_v18, %v368_v15  ;;  %v470_v39 = vadd.f32 %v469_v19, %v368_v15 }
  0x9f   : > { %v514_v23 = vadd.f32 %v513_v22, %v476_v21  ;;  %v533_v24 = vpop.f32.mrf.mxu1 }
  0xa0   : > { %v534_v27 = vadd.f32 %v533_v24, %v476_v21 }
  0xa1   : > { %v576_v29 = vmax.f32 %v410_v25, %v514_v23 }
  0xa2   : > { %v577_v31 = vmax.f32 %v430_v26, %v534_v27 }
  0xa3   : > { %v590_v34 = vmul.f32 %v582_v30, %v576_v29 }
  0xa4   : > { %v591_v32 = vmul.f32 %v583_v28, %v577_v31 }
  0xa5   : > { %v553_v33 = vpop.f32.mrf.mxu2 }
  0xa6   : > { %v598_v35 = vrot.slane %v591_v32, 4  ;;  %v554_v36 = vadd.f32 %v553_v33, %v476_v21  ;;  %v573_v37 = vpop.f32.mrf.mxu3 }
  0xa7   : > { %v574_v40 = vadd.f32 %v573_v37, %v476_v21 }
  0xa8   : > { %v2636_v42 = vsel %vm383_vm0, %v590_v34, %v598_v35  ;;  %v578_v43 = vmax.f32 %v450_v38, %v554_v36  ;;  %v2683_v36 = vld [vmem:[%s2988_s6] sm:$0xff] }
  0xa9   : > { %v579_v45 = vmax.f32 %v470_v39, %v574_v40  ;;  %616 = vst [vmem:[#allocation1] ss:$2 sm:$0xff] %v2636_v42 }
  0xaa   : > { %v592_v47 = vmul.f32 %v584_v44, %v578_v43  ;;  %v2371_v44 = vld [vmem:[%s2988_s6 + $0x8] sm:$0xff] }
  0xab   : > { %v593_v46 = vmul.f32 %v585_v41, %v579_v45 }
  0xad   : > { %v599_v48 = vrot.slane %v593_v46, 4 }
  0xaf   : > { %v2640_v49 = vsel %vm383_vm0, %v592_v47, %v599_v48 }
  0xb0   : > { %605 = vst [vmem:[#allocation2 + $0x8] sm:$0xff] %v2640_v49  ;;  %v619_v50 = vld.sshfl [vmem:[#allocation1] sm:$0xff pattern:$0x75316420] }
  0xb1   : > { %v620_v51 = vld.sshfl [vmem:[#allocation1 + $0x8] sm:$0xff pattern:$0x75316420]  ;;  %623 = vrot.lane.b32.xlu1 %v619_v50, %s2527_s29  ;;  %618 = vst [vmem:[#allocation1 + $0x10] ss:$2 sm:$0xff] %v2640_v49 }
  0xb2   : > { %706 = vst [vmem:[#allocation1] ss:$2 sm:$0xff] %v2636_v42 }
  0xb7   : > { %v607_v52 = vld [vmem:[#allocation2 + $0x8] sm:$0xf] }
  0xb8   : > { %v621_v55 = vld.sshfl [vmem:[#allocation1 + $0x10] sm:$0xff pattern:$0x75316420]  ;;  %v622_v56 = vld.sshfl [vmem:[#allocation1 + $0x18] sm:$0xff pattern:$0x75316420] }
  0xb9   : > { %v709_v53 = vld.sshfl [vmem:[#allocation1] sm:$0xff pattern:$0x75316420]  ;;  %v2645_v54 = vld.sshfl [vmem:[#allocation1 + $0x8] sm:$0xff pattern:$0x75316420]  ;;  %625 = vrot.lane.b32.xlu1 %v620_v51, %s2527_s29  ;;  %627 = vrot.lane.b32.xlu2 %v621_v55, %s2527_s29 }
  0xba   : > { %783 = vst [vmem:[#allocation1] ss:$2 sm:$0xff] %v2636_v42  ;;  %2378 = vmatpush.msk.msra.mxu3 %vm383_vm0, %v709_v53 }
  0xbb   : > { %708 = vst [vmem:[#allocation1 + $0x10] ss:$2 sm:$0xff] %v607_v52  ;;  %2379 = vmatmul.msk.f32.vlgmr.msra.gmra.mxu3 %vm379_vm1, %v2683_v36 }
  0xc1   : > { %v787_v57 = vld.sshfl [vmem:[#allocation1 + $0x8] sm:$0xff pattern:$0x75316420]  ;;  %v786_v58 = vld.sshfl [vmem:[#allocation1] sm:$0xff pattern:$0x75316420]  ;;  %629 = vrot.lane.b32.xlu2 %v622_v56, %s2527_s29 }
  0xc2   : > { %792 = vrot.lane.b32.xlu1 %v787_v57, %s2527_s29  ;;  %790 = vrot.lane.b32.xlu0 %v786_v58, %s2527_s29  ;;  %870 = vst [vmem:[#allocation1] ss:$2 sm:$0xff] %v2636_v42  ;;  %v2650_v59 = vld.sshfl [vmem:[#allocation1 + $0x10] sm:$0xff pattern:$0x75316420] }
  0xc3   : > { %785 = vst [vmem:[#allocation1 + $0x10] ss:$2 sm:$0xff] %v2640_v49 }
  0xc9   : > { %v2653_v60 = vld.sshfl [vmem:[#allocation1] sm:$0xff pattern:$0x75316420]  ;;  %v2655_v61 = vld.sshfl [vmem:[#allocation1 + $0x8] sm:$0xff pattern:$0x75316420] }
  0xca   : > { %951 = vst [vmem:[#allocation1] ss:$2 sm:$0xff] %v2636_v42  ;;  %v788_v62 = vld.sshfl [vmem:[#allocation1 + $0x10] sm:$0xff pattern:$0x75316420] }
  0xcb   : > { %v789_v63 = vld.sshfl [vmem:[#allocation1 + $0x18] sm:$0xff pattern:$0x75316420]  ;;  %794 = vrot.lane.b32.xlu2 %v788_v62, %s2527_s29 }
  0xcc   : > { %796 = vrot.lane.b32.xlu0 %v789_v63, %s2527_s29  ;;  %872 = vst [vmem:[#allocation1 + $0x10] ss:$2 sm:$0xff] %v607_v52 }
  0xd1   : > { %v955_v0 = vld.sshfl [vmem:[#allocation1 + $0x8] sm:$0xff pattern:$0x75316420]  ;;  %v954_v1 = vld.sshfl [vmem:[#allocation1] sm:$0xff pattern:$0x75316420] }
  0xd2   : > { %958 = vrot.lane.b32.xlu1 %v954_v1, %s2528_s30  ;;  %1044 = vst [vmem:[#allocation1] ss:$2 sm:$0xff] %v2636_v42 }
  0xd3   : > { %v2659_v2 = vld.sshfl [vmem:[#allocation1 + $0x10] sm:$0xff pattern:$0x75316420]  ;;  %960 = vrot.lane.b32.xlu2 %v955_v0, %s2528_s30 }
  0xd4   : > { %953 = vst [vmem:[#allocation1 + $0x10] ss:$2 sm:$0xff] %v2640_v49 }
  0xd9   : > { %v1047_v3 = vld.sshfl [vmem:[#allocation1] sm:$0xff pattern:$0x75316420]  ;;  %v1048_v4 = vld.sshfl [vmem:[#allocation1 + $0x8] sm:$0xff pattern:$0x75316420] }
  0xda   : > { %1140 = vst [vmem:[#allocation1] ss:$2 sm:$0xff] %v2636_v42 }
  0xdb   : > { %v956_v5 = vld.sshfl [vmem:[#allocation1 + $0x10] sm:$0xff pattern:$0x75316420]  ;;  %v957_v6 = vld.sshfl [vmem:[#allocation1 + $0x18] sm:$0xff pattern:$0x75316420]  ;;  %1051 = vrot.lane.b32.xlu2 %v1047_v3, %s2528_s30 }
  0xdc   : > { %962 = vrot.lane.b32.xlu0 %v956_v5, %s2528_s30  ;;  %964 = vrot.lane.b32.xlu1 %v957_v6, %s2528_s30  ;;  %1046 = vst [vmem:[#allocation1 + $0x10] ss:$2 sm:$0xff] %v2640_v49 }
  0xe1   : > { %v1143_v7 = vld.sshfl [vmem:[#allocation1] sm:$0xff pattern:$0x75316420]  ;;  %v1144_v8 = vld.sshfl [vmem:[#allocation1 + $0x8] sm:$0xff pattern:$0x75316420] }
  0xe2   : > { %1233 = vst [vmem:[#allocation1] ss:$2 sm:$0xff] %v2636_v42 }
  0xe3   : > { %v1049_v9 = vld.sshfl [vmem:[#allocation1 + $0x10] sm:$0xff pattern:$0x75316420]  ;;  %v1050_v10 = vld.sshfl [vmem:[#allocation1 + $0x18] sm:$0xff pattern:$0x75316420] }
  0xe4   : > { %1053 = vrot.lane.b32.xlu0 %v1048_v4, %s2528_s30  ;;  %1055 = vrot.lane.b32.xlu1 %v1049_v9, %s2528_s30  ;;  %1142 = vst [vmem:[#allocation1 + $0x10] ss:$2 sm:$0xff] %v2640_v49 }
  0xe5   : > { %1057 = vrot.lane.b32.xlu2 %v1050_v10, %s2528_s30 }
  0xe9   : > { %v1237_v11 = vld.sshfl [vmem:[#allocation1 + $0x8] sm:$0xff pattern:$0x75316420]  ;;  %v1236_v12 = vld.sshfl [vmem:[#allocation1] sm:$0xff pattern:$0x75316420] }
  0xea   : > { %1329 = vst [vmem:[#allocation1] ss:$2 sm:$0xff] %v2636_v42 }
  0xeb   : > { %v1145_v13 = vld.sshfl [vmem:[#allocation1 + $0x10] sm:$0xff pattern:$0x75316420]  ;;  %v1146_v14 = vld.sshfl [vmem:[#allocation1 + $0x18] sm:$0xff pattern:$0x75316420] }
  0xec   : > { %1147 = vrot.lane.b32.xlu0 %v1143_v7, %s2529_s11  ;;  %1149 = vrot.lane.b32.xlu1 %v1144_v8, %s2529_s11  ;;  %1235 = vst [vmem:[#allocation1 + $0x10] ss:$2 sm:$0xff] %v2640_v49 }
  0xed   : > { %1151 = vrot.lane.b32.xlu2 %v1145_v13, %s2529_s11 }
  0xf1   : > { %v1332_v15 = vld.sshfl [vmem:[#allocation1] sm:$0xff pattern:$0x75316420]  ;;  %v1333_v16 = vld.sshfl [vmem:[#allocation1 + $0x8] sm:$0xff pattern:$0x75316420] }
  0xf2   : > { %1422 = vst [vmem:[#allocation1] ss:$2 sm:$0xff] %v2636_v42 }
  0xf3   : > { %v1238_v17 = vld.sshfl [vmem:[#allocation1 + $0x10] sm:$0xff pattern:$0x75316420]  ;;  %v1239_v18 = vld.sshfl [vmem:[#allocation1 + $0x18] sm:$0xff pattern:$0x75316420] }
  0xf4   : > { %1153 = vrot.lane.b32.xlu0 %v1146_v14, %s2529_s11  ;;  %1240 = vrot.lane.b32.xlu1 %v1236_v12, %s2529_s11  ;;  %1331 = vst [vmem:[#allocation1 + $0x10] ss:$2 sm:$0xff] %v2640_v49  ;;  %v2397_v12 = vld [vmem:[%s2988_s6 + $0x10] sm:$0xff] }
  0xf5   : > { %1242 = vrot.lane.b32.xlu2 %v1237_v11, %s2529_s11 }
  0xf9   : > { %v1425_v19 = vld.sshfl [vmem:[#allocation1] sm:$0xff pattern:$0x75316420]  ;;  %v1426_v20 = vld.sshfl [vmem:[#allocation1 + $0x8] sm:$0xff pattern:$0x75316420] }
  0xfa   : > { %1518 = vst [vmem:[#allocation1] ss:$2 sm:$0xff] %v2636_v42 }
  0xfb   : > { %v1334_v21 = vld.sshfl [vmem:[#allocation1 + $0x10] sm:$0xff pattern:$0x75316420]  ;;  %v1335_v22 = vld.sshfl [vmem:[#allocation1 + $0x18] sm:$0xff pattern:$0x75316420] }
  0xfc   : > { %1244 = vrot.lane.b32.xlu0 %v1238_v17, %s2529_s11  ;;  %1246 = vrot.lane.b32.xlu1 %v1239_v18, %s2529_s11  ;;  %1424 = vst [vmem:[#allocation1 + $0x10] ss:$2 sm:$0xff] %v2640_v49 }
  0xfd   : > { %1336 = vrot.lane.b32.xlu2 %v1332_v15, %s2530_s12 }
 0x101   : > { %v1522_v23 = vld.sshfl [vmem:[#allocation1 + $0x8] sm:$0xff pattern:$0x75316420]  ;;  %v1521_v24 = vld.sshfl [vmem:[#allocation1] sm:$0xff pattern:$0x75316420] }
 0x102   : > { %1611 = vst [vmem:[#allocation1] ss:$2 sm:$0xff] %v2636_v42 }
 0x103   : > { %v1427_v25 = vld.sshfl [vmem:[#allocation1 + $0x10] sm:$0xff pattern:$0x75316420]  ;;  %v1428_v26 = vld.sshfl [vmem:[#allocation1 + $0x18] sm:$0xff pattern:$0x75316420] }
 0x104   : > { %1338 = vrot.lane.b32.xlu0 %v1333_v16, %s2530_s12  ;;  %1340 = vrot.lane.b32.xlu1 %v1334_v21, %s2530_s12  ;;  %1520 = vst [vmem:[#allocation1 + $0x10] ss:$2 sm:$0xff] %v2640_v49  ;;  %v2404_v21 = vld [vmem:[%s2989_s7 + $0x10] sm:$0xff] }
 0x105   : > { %1342 = vrot.lane.b32.xlu2 %v1335_v22, %s2530_s12 }
 0x109   : > { %v1614_v27 = vld.sshfl [vmem:[#allocation1] sm:$0xff pattern:$0x75316420]  ;;  %v1615_v28 = vld.sshfl [vmem:[#allocation1 + $0x8] sm:$0xff pattern:$0x75316420] }
 0x10a   : > { %1707 = vst [vmem:[#allocation1] ss:$2 sm:$0xff] %v2636_v42 }
 0x10b   : > { %v1523_v29 = vld.sshfl [vmem:[#allocation1 + $0x10] sm:$0xff pattern:$0x75316420]  ;;  %v1524_v30 = vld.sshfl [vmem:[#allocation1 + $0x18] sm:$0xff pattern:$0x75316420] }
 0x10c   : > { %1429 = vrot.lane.b32.xlu0 %v1425_v19, %s2530_s12  ;;  %1431 = vrot.lane.b32.xlu1 %v1426_v20, %s2530_s12  ;;  %1613 = vst [vmem:[#allocation1 + $0x10] ss:$2 sm:$0xff] %v2640_v49 }
 0x10d   : > { %1433 = vrot.lane.b32.xlu2 %v1427_v25, %s2530_s12 }
 0x111   : > { %v1710_v31 = vld.sshfl [vmem:[#allocation1] sm:$0xff pattern:$0x75316420]  ;;  %v1711_v32 = vld.sshfl [vmem:[#allocation1 + $0x8] sm:$0xff pattern:$0x75316420] }
 0x112   : > { %1800 = vst [vmem:[#allocation1] ss:$2 sm:$0xff] %v2636_v42 }
 0x113   : > { %v1616_v33 = vld.sshfl [vmem:[#allocation1 + $0x10] sm:$0xff pattern:$0x75316420]  ;;  %v1617_v34 = vld.sshfl [vmem:[#allocation1 + $0x18] sm:$0xff pattern:$0x75316420]  ;;  %v628_v35 = vpop.permute.xlu2 %627 }
 0x114   : > { %1435 = vrot.lane.b32.xlu0 %v1428_v26, %s2530_s12  ;;  %1525 = vrot.lane.b32.xlu1 %v1521_v24, %s2531_s15  ;;  %1709 = vst [vmem:[#allocation1 + $0x10] ss:$2 sm:$0xff] %v2640_v49 }
 0x115   : > { %1527 = vrot.lane.b32.xlu2 %v1522_v23, %s2531_s15 }
 0x119   : > { %v1804_v37 = vld.sshfl [vmem:[#allocation1 + $0x8] sm:$0xff pattern:$0x75316420]  ;;  %v1803_v38 = vld.sshfl [vmem:[#allocation1] sm:$0xff pattern:$0x75316420] }
 0x11a   : > { %1896 = vst [vmem:[#allocation1] ss:$2 sm:$0xff] %v2636_v42 }
 0x11b   : > { %v1712_v39 = vld.sshfl [vmem:[#allocation1 + $0x10] sm:$0xff pattern:$0x75316420]  ;;  %v1713_v40 = vld.sshfl [vmem:[#allocation1 + $0x18] sm:$0xff pattern:$0x75316420]  ;;  %v630_v41 = vpop.permute.xlu2 %629 }
 0x11c   : > { %1529 = vrot.lane.b32.xlu0 %v1523_v29, %s2531_s15  ;;  %1531 = vrot.lane.b32.xlu1 %v1524_v30, %s2531_s15  ;;  %1802 = vst [vmem:[#allocation1 + $0x10] ss:$2 sm:$0xff] %v2640_v49  ;;  %v634_v43 = vsel %vm631_vm2, %v628_v35, %v630_v41  ;;  %v2411_v29 = vld [vmem:[%s2988_s6 + $0x18] sm:$0xff] }
 0x11d   : > { %1618 = vrot.lane.b32.xlu2 %v1614_v27, %s2531_s15  ;;  %2376 = vmatpush.msk.msra.mxu2 %vm383_vm0, %v634_v43  ;;  %v2268_v43 = vld [vmem:[%s2990_s8] sm:$0xff] }
 0x11e   : > { %2377 = vmatmul.msk.f32.vlgmr.msra.gmra.mxu2 %vm379_vm1, %v2371_v44 }
 0x121   : > { %v1899_v45 = vld.sshfl [vmem:[#allocation1] sm:$0xff pattern:$0x75316420]  ;;  %v2698_v46 = vld.sshfl [vmem:[#allocation1 + $0x8] sm:$0xff pattern:$0x75316420] }
 0x122   : > { %1989 = vst [vmem:[#allocation1] ss:$2 sm:$0xff] %v2636_v42 }
 0x123   : > { %v1805_v47 = vld.sshfl [vmem:[#allocation1 + $0x10] sm:$0xff pattern:$0x75316420]  ;;  %v1806_v48 = vld.sshfl [vmem:[#allocation1 + $0x18] sm:$0xff pattern:$0x75316420]  ;;  %v624_v50 = vpop.permute.xlu1 %623 }
 0x124   : > { %1620 = vrot.lane.b32.xlu0 %v1615_v28, %s2531_s15  ;;  %1622 = vrot.lane.b32.xlu1 %v1616_v33, %s2531_s15  ;;  %1898 = vst [vmem:[#allocation1 + $0x10] ss:$2 sm:$0xff] %v2640_v49 }
 0x125   : > { %1624 = vrot.lane.b32.xlu2 %v1617_v34, %s2531_s15  ;;  %v795_v51 = vpop.permute.xlu2 %794 }
 0x129   : > { %v2705_v52 = vld.sshfl [vmem:[#allocation1] sm:$0xff pattern:$0x75316420]  ;;  %v2707_v53 = vld.sshfl [vmem:[#allocation1 + $0x8] sm:$0xff pattern:$0x75316420] }
 0x12a   : > { %2085 = vst [vmem:[#allocation1] ss:$2 sm:$0xff] %v2636_v42 }
 0x12b   : > { %v1901_v55 = vld.sshfl [vmem:[#allocation1 + $0x10] sm:$0xff pattern:$0x75316420]  ;;  %v1902_v56 = vld.sshfl [vmem:[#allocation1 + $0x18] sm:$0xff pattern:$0x75316420]  ;;  %v626_v57 = vpop.permute.xlu1 %625 }
 0x12c   : > { %1714 = vrot.lane.b32.xlu0 %v1710_v31, %s2532_s20  ;;  %1716 = vrot.lane.b32.xlu1 %v1711_v32, %s2532_s20  ;;  %1991 = vst [vmem:[#allocation1 + $0x10] ss:$2 sm:$0xff] %v2640_v49  ;;  %v632_v58 = vsel %vm631_vm2, %v624_v50, %v626_v57  ;;  %v633_v62 = vsel %vm631_vm2, %v626_v57, %v628_v35 }
 0x12d   : > { %1718 = vrot.lane.b32.xlu2 %v1712_v39, %s2532_s20  ;;  %v2716_v63 = vpop.permute.xlu2 %960  ;;  %2372 = vmatpush.msk.msra.mxu0 %vm383_vm0, %v632_v58 }
 0x12e   : > { %2374 = vmatpush.msk.msra.mxu1 %vm383_vm0, %v633_v62  ;;  %2373 = vmatmul.msk.f32.vlgmr.msra.gmra.mxu0 %vm379_vm1, %v2371_v44 }
 0x12f   : > { %2380 = vmatpush.msk.msrb.mxu0 %vm383_vm0, %v2645_v54  ;;  %2375 = vmatmul.msk.f32.vlgmr.msra.gmra.mxu1 %vm379_vm1, %v2371_v44 }
 0x130   : > { %2382 = vmatpush.msk.msrb.mxu1 %vm383_vm0, %v2650_v59 }
 0x131   : > { %v2728_v0 = vld.sshfl [vmem:[#allocation1 + $0x8] sm:$0xff pattern:$0x75316420]  ;;  %v2088_v1 = vld.sshfl [vmem:[#allocation1] sm:$0xff pattern:$0x75316420] }
 0x132   : > { %2391 = vmatpush.msk.msra.mxu1 %vm383_vm0, %v2653_v60  ;;  %2178 = vst [vmem:[#allocation1] ss:$2 sm:$0xff] %v2636_v42  ;;  %v2384_v42 = vld [vmem:[%s2989_s7 + $0x8] sm:$0xff] }
 0x133   : > { %v1994_v3 = vld.sshfl [vmem:[#allocation1 + $0x10] sm:$0xff pattern:$0x75316420]  ;;  %v1995_v4 = vld.sshfl [vmem:[#allocation1 + $0x18] sm:$0xff pattern:$0x75316420] }
 0x134   : > { %1720 = vrot.lane.b32.xlu0 %v1713_v40, %s2532_s20  ;;  %1807 = vrot.lane.b32.xlu1 %v1803_v38, %s2532_s20  ;;  %v793_v54 = vpop.permute.xlu1 %792  ;;  %v791_v59 = vpop.permute.xlu0 %790  ;;  %2087 = vst [vmem:[#allocation1 + $0x10] ss:$2 sm:$0xff] %v2640_v49  ;;  %v2418_v38 = vld [vmem:[%s2989_s7 + $0x18] sm:$0xff] }
 0x135   : > { %1809 = vrot.lane.b32.xlu2 %v1804_v37, %s2532_s20  ;;  %v799_v5 = vsel %vm631_vm2, %v793_v54, %v795_v51  ;;  %v798_v60 = vsel %vm631_vm2, %v791_v59, %v793_v54  ;;  %v1052_v6 = vpop.permute.xlu2 %1051  ;;  %v2439_v59 = vld [vmem:[%s2988_s6 + $0x28] sm:$0xff] }
 0x136   : > { %2385 = vmatpush.msk.msrb.mxu2 %vm383_vm0, %v798_v60  ;;  %2387 = vmatpush.msk.msrb.mxu3 %vm383_vm0, %v799_v5 }
 0x137   : > { %2381 = vmatmul.msk.f32.vlgmr.msrb.gmra.mxu0 %vm379_vm1, %v2683_v36  ;;  %2383 = vmatmul.msk.f32.vlgmr.msrb.gmra.mxu1 %vm379_vm1, %v2683_v36 }
 0x138   : > { %2393 = vmatpush.msk.msra.mxu2 %vm383_vm0, %v2655_v61  ;;  %2395 = vmatpush.msk.msra.mxu3 %vm383_vm0, %v2659_v2  ;;  %v609_v61 = vld [vmem:[%s2989_s7] sm:$0xff] }
 0x139   : > { %2386 = vmatmul.msk.f32.vlgmr.msrb.gmra.mxu2 %vm379_vm1, %v2384_v42  ;;  %2388 = vmatmul.msk.f32.vlgmr.msrb.gmra.mxu3 %vm379_vm1, %v2384_v42  ;;  %v2181_v26 = vld.sshfl [vmem:[#allocation1] sm:$0xff pattern:$0x75316420]  ;;  %v2182_v33 = vld.sshfl [vmem:[#allocation1 + $0x8] sm:$0xff pattern:$0x75316420] }
 0x13b   : > { %v2090_v7 = vld.sshfl [vmem:[#allocation1 + $0x10] sm:$0xff pattern:$0x75316420]  ;;  %v2091_v8 = vld.sshfl [vmem:[#allocation1 + $0x18] sm:$0xff pattern:$0x75316420] }
 0x13c   : > { %1811 = vrot.lane.b32.xlu0 %v1805_v47, %s2532_s20  ;;  %1813 = vrot.lane.b32.xlu1 %v1806_v48, %s2532_s20  ;;  %2180 = vst [vmem:[#allocation1 + $0x10] ss:$2 sm:$0xff] %v2640_v49 }
 0x13d   : > { %1903 = vrot.lane.b32.xlu2 %v1899_v45, %s2533_s23 }
 0x13e   : > { %v797_v2 = vpop.permute.xlu0 %796 }
 0x13f   : > { %v800_v9 = vsel %vm631_vm2, %v795_v51, %v797_v2  ;;  %v1058_v10 = vpop.permute.xlu2 %1057  ;;  %2392 = vmatmul.msk.f32.vlgmr.msra.gmra.mxu1 %vm379_vm1, %v609_v61 }
 0x140   : > { %2389 = vmatpush.msk.msra.mxu0 %vm383_vm0, %v800_v9 }
 0x141   : > { %2390 = vmatmul.msk.f32.vlgmr.msra.gmra.mxu0 %vm379_vm1, %v2384_v42  ;;  %2394 = vmatmul.msk.f32.vlgmr.msra.gmra.mxu2 %vm379_vm1, %v609_v61 }
 0x142   : > { %2396 = vmatmul.msk.f32.vlgmr.msra.gmra.mxu3 %vm379_vm1, %v609_v61 }
 0x143   : > { %v2183_v34 = vld.sshfl [vmem:[#allocation1 + $0x10] sm:$0xff pattern:$0x75316420]  ;;  %v2184_v35 = vld.sshfl [vmem:[#allocation1 + $0x18] sm:$0xff pattern:$0x75316420] }
 0x144   : > { %1905 = vrot.lane.b32.xlu0 %v2698_v46, %s2533_s23  ;;  %1907 = vrot.lane.b32.xlu1 %v1901_v55, %s2533_s23  ;;  %v959_v49 = vpop.permute.xlu1 %958 }
 0x145   : > { %1909 = vrot.lane.b32.xlu2 %v1902_v56, %s2533_s23  ;;  %v967_v11 = vsel %vm966_vm3, %v959_v49, %v2716_v63 }
 0x146   : > { %2398 = vmatpush.msk.msrb.mxu0 %vm383_vm0, %v967_v11 }
 0x147   : > { %v1152_v13 = vpop.permute.xlu2 %1151 }
 0x149   : > { %2399 = vmatmul.msk.f32.vlgmr.msrb.gmra.mxu0 %vm379_vm1, %v2397_v12 }
 0x14c   : > { %1996 = vrot.lane.b32.xlu0 %v2705_v52, %s2533_s23  ;;  %1998 = vrot.lane.b32.xlu1 %v2707_v53, %s2533_s23  ;;  %v2425_v52 = vld [vmem:[%s2988_s6 + $0x20] sm:$0xff] }
 0x14d   : > { %2000 = vrot.lane.b32.xlu2 %v1994_v3, %s2533_s23 }
 0x14e   : > { %v963_v14 = vpop.permute.xlu0 %962  ;;  %v965_v15 = vpop.permute.xlu1 %964 }
 0x14f   : > { %v968_v16 = vsel %vm966_vm3, %v2716_v63, %v963_v14  ;;  %v969_v17 = vsel %vm966_vm3, %v963_v14, %v965_v15  ;;  %v1243_v18 = vpop.permute.xlu2 %1242  ;;  %v2432_v63 = vld [vmem:[%s2989_s7 + $0x20] sm:$0xff] }
 0x150   : > { %2400 = vmatpush.msk.msrb.mxu1 %vm383_vm0, %v968_v16  ;;  %2402 = vmatpush.msk.msrb.mxu2 %vm383_vm0, %v969_v17  ;;  %v2453_v16 = vld [vmem:[%s2988_s6 + $0x30] sm:$0xff] }
 0x151   : > { %2401 = vmatmul.msk.f32.vlgmr.msrb.gmra.mxu1 %vm379_vm1, %v2397_v12  ;;  %2403 = vmatmul.msk.f32.vlgmr.msrb.gmra.mxu2 %vm379_vm1, %v2397_v12 }
 0x154   : > { %2002 = vrot.lane.b32.xlu0 %v1995_v4, %s2533_s23  ;;  %2092 = vrot.lane.b32.xlu1 %v2088_v1, %s2534_s28  ;;  %s2498_s23 = smul.u32 24, %s2994_s14 }
 0x155   : > { %2094 = vrot.lane.b32.xlu2 %v2728_v0, %s2534_s28 }
 0x156   : > { %v1054_v19 = vpop.permute.xlu0 %1053  ;;  %v1056_v20 = vpop.permute.xlu1 %1055  ;;  %s359_s26 = scalar_lea.vmem %s2992_s10, %s2498_s23 }
 0x157   : > { %v1059_v22 = vsel %vm966_vm3, %v1052_v6, %v1054_v19  ;;  %v1060_v23 = vsel %vm966_vm3, %v1054_v19, %v1056_v20  ;;  %v1061_v24 = vsel %vm966_vm3, %v1056_v20, %v1058_v10  ;;  %v1337_v25 = vpop.permute.xlu2 %1336  ;;  %v2446_v10 = vld [vmem:[%s2989_s7 + $0x28] sm:$0xff] }
 0x158   : > { %2405 = vmatpush.msk.msrb.mxu3 %vm383_vm0, %v1059_v22  ;;  %2407 = vmatpush.msk.msra.mxu0 %vm383_vm0, %v1060_v23  ;;  %v2460_v22 = vld [vmem:[%s2989_s7 + $0x30] sm:$0xff] }
 0x159   : > { %2409 = vmatpush.msk.msra.mxu1 %vm383_vm0, %v1061_v24  ;;  %2406 = vmatmul.msk.f32.vlgmr.msrb.gmra.mxu3 %vm379_vm1, %v2404_v21 }
 0x15a   : > { %2408 = vmatmul.msk.f32.vlgmr.msra.gmra.mxu0 %vm379_vm1, %v2404_v21  ;;  %2410 = vmatmul.msk.f32.vlgmr.msra.gmra.mxu1 %vm379_vm1, %v2404_v21 }
 0x15c   : > { %2096 = vrot.lane.b32.xlu0 %v2090_v7, %s2534_s28  ;;  %2098 = vrot.lane.b32.xlu1 %v2091_v8, %s2534_s28 }
 0x15d   : > { %2185 = vrot.lane.b32.xlu2 %v2181_v26, %s2534_s28 }
 0x15e   : > { %v1148_v27 = vpop.permute.xlu0 %1147  ;;  %v1150_v28 = vpop.permute.xlu1 %1149 }
 0x15f   : > { %v1156_v30 = vsel %vm1155_vm4, %v1148_v27, %v1150_v28  ;;  %v1157_v31 = vsel %vm1155_vm4, %v1150_v28, %v1152_v13  ;;  %v1343_v32 = vpop.permute.xlu2 %1342 }
 0x160   : > { %2412 = vmatpush.msk.msra.mxu2 %vm383_vm0, %v1156_v30  ;;  %2414 = vmatpush.msk.msra.mxu3 %vm383_vm0, %v1157_v31 }
 0x161   : > { %2413 = vmatmul.msk.f32.vlgmr.msra.gmra.mxu2 %vm379_vm1, %v2411_v29  ;;  %2415 = vmatmul.msk.f32.vlgmr.msra.gmra.mxu3 %vm379_vm1, %v2411_v29 }
 0x164   : > { %2187 = vrot.lane.b32.xlu0 %v2182_v33, %s2534_s28  ;;  %2189 = vrot.lane.b32.xlu1 %v2183_v34, %s2534_s28 }
 0x165   : > { %2191 = vrot.lane.b32.xlu2 %v2184_v35, %s2534_s28 }
 0x166   : > { %v1154_v36 = vpop.permute.xlu0 %1153  ;;  %v1241_v37 = vpop.permute.xlu1 %1240 }
 0x167   : > { %v1158_v39 = vsel %vm1155_vm4, %v1152_v13, %v1154_v36  ;;  %v1248_v40 = vsel %vm1155_vm4, %v1241_v37, %v1243_v18  ;;  %v1434_v41 = vpop.permute.xlu2 %1433  ;;  %v2467_v37 = vld [vmem:[%s2988_s6 + $0x38] sm:$0xff] }
 0x168   : > { %2416 = vmatpush.msk.msrb.mxu0 %vm383_vm0, %v1158_v39  ;;  %2419 = vmatpush.msk.msrb.mxu1 %vm383_vm0, %v1248_v40 }
 0x169   : > { %2417 = vmatmul.msk.f32.vlgmr.msrb.gmra.mxu0 %vm379_vm1, %v2411_v29  ;;  %2420 = vmatmul.msk.f32.vlgmr.msrb.gmra.mxu1 %vm379_vm1, %v2418_v38 }
 0x16c   : > { %2271 = vperm.xlu0 %2516, %v2268_v43  }
 0x16e   : > { %v1245_v44 = vpop.permute.xlu0 %1244  ;;  %v1247_v45 = vpop.permute.xlu1 %1246 }
 0x16f   : > { %v1249_v46 = vsel %vm1155_vm4, %v1243_v18, %v1245_v44  ;;  %v1250_v47 = vsel %vm1155_vm4, %v1245_v44, %v1247_v45  ;;  %v1528_v48 = vpop.permute.xlu2 %1527  ;;  %v738_v45 = vpop.f32.mrf.mxu3 }
 0x170   : > { %2421 = vmatpush.msk.msrb.mxu2 %vm383_vm0, %v1249_v46  ;;  %2423 = vmatpush.msk.msrb.mxu3 %vm383_vm0, %v1250_v47 }
 0x171   : > { %2422 = vmatmul.msk.f32.vlgmr.msrb.gmra.mxu2 %vm379_vm1, %v2418_v38  ;;  %2424 = vmatmul.msk.f32.vlgmr.msrb.gmra.mxu3 %vm379_vm1, %v2418_v38 }
 0x176   : > { %v1339_v50 = vpop.permute.xlu0 %1338  ;;  %v1341_v51 = vpop.permute.xlu1 %1340 }
 0x177   : > { %v1345_v53 = vsel %vm1344_vm5, %v1337_v25, %v1339_v50  ;;  %v1346_v55 = vsel %vm1344_vm5, %v1339_v50, %v1341_v51  ;;  %v1347_v56 = vsel %vm1344_vm5, %v1341_v51, %v1343_v32  ;;  %v1619_v57 = vpop.permute.xlu2 %1618 }
 0x178   : > { %2426 = vmatpush.msk.msra.mxu0 %vm383_vm0, %v1345_v53  ;;  %2428 = vmatpush.msk.msra.mxu1 %vm383_vm0, %v1346_v55  ;;  %v2277_v55 = vld [vmem:[%s2991_s9] sm:$0xff] }
 0x179   : > { %2430 = vmatpush.msk.msra.mxu2 %vm383_vm0, %v1347_v56  ;;  %2427 = vmatmul.msk.f32.vlgmr.msra.gmra.mxu0 %vm379_vm1, %v2425_v52 }
 0x17a   : > { %2431 = vmatmul.msk.f32.vlgmr.msra.gmra.mxu2 %vm379_vm1, %v2425_v52  ;;  %2429 = vmatmul.msk.f32.vlgmr.msra.gmra.mxu1 %vm379_vm1, %v2425_v52  ;;  %v2474_v52 = vld [vmem:[%s2989_s7 + $0x38] sm:$0xff] }
 0x17b   : > { %2280 = vperm.xlu1 %2517, %v2277_v55  }
 0x17e   : > { %v1430_v58 = vpop.permute.xlu0 %1429  ;;  %v1432_v62 = vpop.permute.xlu1 %1431 }
 0x17f   : > { %v1437_v0 = vsel %vm1344_vm5, %v1430_v58, %v1432_v62  ;;  %v1438_v1 = vsel %vm1344_vm5, %v1432_v62, %v1434_v41  ;;  %v1625_v3 = vpop.permute.xlu2 %1624 }
 0x180   : > { %2433 = vmatpush.msk.msra.mxu3 %vm383_vm0, %v1437_v0  ;;  %2435 = vmatpush.msk.msrb.mxu0 %vm383_vm0, %v1438_v1 }
 0x181   : > { %2434 = vmatmul.msk.f32.vlgmr.msra.gmra.mxu3 %vm379_vm1, %v2432_v63  ;;  %2436 = vmatmul.msk.f32.vlgmr.msrb.gmra.mxu0 %vm379_vm1, %v2432_v63 }
 0x186   : > { %v1436_v4 = vpop.permute.xlu0 %1435  ;;  %v1526_v54 = vpop.permute.xlu1 %1525 }
 0x187   : > { %v1439_v5 = vsel %vm1344_vm5, %v1434_v41, %v1436_v4  ;;  %v1534_v60 = vsel %vm1533_vm6, %v1526_v54, %v1528_v48  ;;  %v1719_v42 = vpop.permute.xlu2 %1718  ;;  %v2481_v54 = vld [vmem:[%s2988_s6 + $0x40] sm:$0xff] }
 0x188   : > { %2437 = vmatpush.msk.msrb.mxu1 %vm383_vm0, %v1439_v5  ;;  %2440 = vmatpush.msk.msrb.mxu2 %vm383_vm0, %v1534_v60 }
 0x189   : > { %2441 = vmatmul.msk.f32.vlgmr.msrb.gmra.mxu2 %vm379_vm1, %v2439_v59  ;;  %2438 = vmatmul.msk.f32.vlgmr.msrb.gmra.mxu1 %vm379_vm1, %v2432_v63 }
 0x18e   : > { %v1530_v6 = vpop.permute.xlu0 %1529  ;;  %v1532_v7 = vpop.permute.xlu1 %1531 }
 0x18f   : > { %v1535_v8 = vsel %vm1533_vm6, %v1528_v48, %v1530_v6  ;;  %v1536_v61 = vsel %vm1533_vm6, %v1530_v6, %v1532_v7  ;;  %v1810_v13 = vpop.permute.xlu2 %1809 }
 0x190   : > { %2442 = vmatpush.msk.msrb.mxu3 %vm383_vm0, %v1535_v8  ;;  %2444 = vmatpush.msk.msra.mxu0 %vm383_vm0, %v1536_v61 }
 0x191   : > { %2443 = vmatmul.msk.f32.vlgmr.msrb.gmra.mxu3 %vm379_vm1, %v2439_v59  ;;  %2445 = vmatmul.msk.f32.vlgmr.msra.gmra.mxu0 %vm379_vm1, %v2439_v59 }
 0x196   : > { %v1621_v2 = vpop.permute.xlu0 %1620  ;;  %v1623_v9 = vpop.permute.xlu1 %1622 }
 0x197   : > { %v1626_v49 = vsel %vm1533_vm6, %v1619_v57, %v1621_v2  ;;  %v1627_v11 = vsel %vm1533_vm6, %v1621_v2, %v1623_v9  ;;  %v1628_v12 = vsel %vm1533_vm6, %v1623_v9, %v1625_v3  ;;  %v1904_v19 = vpop.permute.xlu2 %1903 }
 0x198   : > { %2447 = vmatpush.msk.msra.mxu1 %vm383_vm0, %v1626_v49  ;;  %2449 = vmatpush.msk.msra.mxu2 %vm383_vm0, %v1627_v11 }
 0x199   : > { %2448 = vmatmul.msk.f32.vlgmr.msra.gmra.mxu1 %vm379_vm1, %v2446_v10  ;;  %2451 = vmatpush.msk.msra.mxu3 %vm383_vm0, %v1628_v12 }
 0x19a   : > { %2450 = vmatmul.msk.f32.vlgmr.msra.gmra.mxu2 %vm379_vm1, %v2446_v10  ;;  %2452 = vmatmul.msk.f32.vlgmr.msra.gmra.mxu3 %vm379_vm1, %v2446_v10 }
 0x19e   : > { %v1715_v14 = vpop.permute.xlu0 %1714  ;;  %v1717_v15 = vpop.permute.xlu1 %1716 }
 0x19f   : > { %v1723_v17 = vsel %vm1722_vm7, %v1715_v14, %v1717_v15  ;;  %v1724_v18 = vsel %vm1722_vm7, %v1717_v15, %v1719_v42  ;;  %v1910_v25 = vpop.permute.xlu2 %1909 }
 0x1a0   : > { %2454 = vmatpush.msk.msrb.mxu0 %vm383_vm0, %v1723_v17  ;;  %2456 = vmatpush.msk.msrb.mxu1 %vm383_vm0, %v1724_v18 }
 0x1a1   : > { %2455 = vmatmul.msk.f32.vlgmr.msrb.gmra.mxu0 %vm379_vm1, %v2453_v16  ;;  %2457 = vmatmul.msk.f32.vlgmr.msrb.gmra.mxu1 %vm379_vm1, %v2453_v16  ;;  %v701_v32 = vpop.f32.mrf.mxu2 }
 0x1a6   : > { %v1721_v20 = vpop.permute.xlu0 %1720  ;;  %v1808_v21 = vpop.permute.xlu1 %1807 }
 0x1a7   : > { %v1725_v23 = vsel %vm1722_vm7, %v1719_v42, %v1721_v20  ;;  %v1815_v24 = vsel %vm1722_vm7, %v1808_v21, %v1810_v13  ;;  %v2001_v38 = vpop.permute.xlu2 %2000 }
 0x1a8   : > { %2458 = vmatpush.msk.msrb.mxu2 %vm383_vm0, %v1725_v23  ;;  %2461 = vmatpush.msk.msrb.mxu3 %vm383_vm0, %v1815_v24 }
 0x1a9   : > { %2459 = vmatmul.msk.f32.vlgmr.msrb.gmra.mxu2 %vm379_vm1, %v2453_v16  ;;  %2462 = vmatmul.msk.f32.vlgmr.msrb.gmra.mxu3 %vm379_vm1, %v2460_v22 }
 0x1ab   : > { %v661_v26 = vpop.f32.mrf.mxu0 }
 0x1ac   : > { %v681_v27 = vpop.f32.mrf.mxu1  ;;  %v739_v46 = vadd.f32 %v738_v45, %v661_v26 }
 0x1ae   : > { %v1812_v28 = vpop.permute.xlu0 %1811  ;;  %v1814_v29 = vpop.permute.xlu1 %1813 }
 0x1af   : > { %v1816_v30 = vsel %vm1722_vm7, %v1810_v13, %v1812_v28  ;;  %v1817_v31 = vsel %vm1722_vm7, %v1812_v28, %v1814_v29  ;;  %v2095_v62 = vpop.permute.xlu2 %2094  ;;  %v2488_v13 = vld [vmem:[%s2989_s7 + $0x40] sm:$0xff] }
 0x1b0   : > { %2463 = vmatpush.msk.msra.mxu0 %vm383_vm0, %v1816_v30  ;;  %2465 = vmatpush.msk.msra.mxu1 %vm383_vm0, %v1817_v31 }
 0x1b1   : > { %2464 = vmatmul.msk.f32.vlgmr.msra.gmra.mxu0 %vm379_vm1, %v2460_v22  ;;  %2466 = vmatmul.msk.f32.vlgmr.msra.gmra.mxu1 %vm379_vm1, %v2460_v22 }
 0x1b4   : > { %v758_v33 = vpop.f32.mrf.mxu0  ;;  %v778_v34 = vpop.f32.mrf.mxu1 }
 0x1b5   : > { %v759_v43 = vadd.f32 %v758_v33, %v681_v27  ;;  %v2917_v44 = vadd.f32 %v778_v34, %v701_v32 }
 0x1b6   : > { %v1906_v35 = vpop.permute.xlu0 %1905  ;;  %v1908_v36 = vpop.permute.xlu1 %1907 }
 0x1b7   : > { %v1912_v39 = vsel %vm1911_vm8, %v1904_v19, %v1906_v35  ;;  %v1913_v40 = vsel %vm1911_vm8, %v1906_v35, %v1908_v36  ;;  %v1914_v41 = vsel %vm1911_vm8, %v1908_v36, %v1910_v25  ;;  %v2186_v6 = vpop.permute.xlu2 %2185 }
 0x1b8   : > { %2468 = vmatpush.msk.msra.mxu2 %vm383_vm0, %v1912_v39  ;;  %2470 = vmatpush.msk.msra.mxu3 %vm383_vm0, %v1913_v40 }
 0x1b9   : > { %2469 = vmatmul.msk.f32.vlgmr.msra.gmra.mxu2 %vm379_vm1, %v2467_v37  ;;  %2472 = vmatpush.msk.msrb.mxu0 %vm383_vm0, %v1914_v41 }
 0x1ba   : > { %2471 = vmatmul.msk.f32.vlgmr.msra.gmra.mxu3 %vm379_vm1, %v2467_v37  ;;  %2473 = vmatmul.msk.f32.vlgmr.msrb.gmra.mxu0 %vm379_vm1, %v2467_v37 }
 0x1bc   : > { %v827_v47 = vpop.f32.mrf.mxu2  ;;  %v902_v48 = vpop.f32.mrf.mxu1 }
 0x1bd   : > { %v2926_v53 = vadd.f32 %v902_v48, %v827_v47  ;;  %v847_v63 = vpop.f32.mrf.mxu3 }
 0x1be   : > { %v1997_v50 = vpop.permute.xlu0 %1996  ;;  %v1999_v51 = vpop.permute.xlu1 %1998 }
 0x1bf   : > { %v2004_v56 = vsel %vm1911_vm8, %v1997_v50, %v1999_v51  ;;  %v2005_v57 = vsel %vm1911_vm8, %v1999_v51, %v2001_v38  ;;  %v2933_v58 = vpop.f32.mrf.mxu0  ;;  %v2192_v49 = vpop.permute.xlu2 %2191 }
 0x1c0   : > { %2475 = vmatpush.msk.msrb.mxu1 %vm383_vm0, %v2004_v56  ;;  %2477 = vmatpush.msk.msrb.mxu2 %vm383_vm0, %v2005_v57 }
 0x1c1   : > { %2476 = vmatmul.msk.f32.vlgmr.msrb.gmra.mxu1 %vm379_vm1, %v2474_v52  ;;  %2478 = vmatmul.msk.f32.vlgmr.msrb.gmra.mxu2 %vm379_vm1, %v2474_v52 }
 0x1c4   : > { %v922_v0 = vpop.f32.mrf.mxu2 }
 0x1c5   : > { %v2939_v1 = vadd.f32 %v922_v0, %v847_v63  ;;  %v942_v17 = vpop.f32.mrf.mxu3 }
 0x1c6   : > { %v2003_v3 = vpop.permute.xlu0 %2002  ;;  %v2093_v4 = vpop.permute.xlu1 %2092  ;;  %v943_v48 = vadd.f32 %v942_v17, %v2933_v58 }
 0x1c7   : > { %v2006_v59 = vsel %vm1911_vm8, %v2001_v38, %v2003_v3  ;;  %v2101_v5 = vsel %vm2100_vm9, %v2093_v4, %v2095_v62  ;;  %v996_v60 = vpop.f32.mrf.mxu0 }
 0x1c8   : > { %2479 = vmatpush.msk.msrb.mxu3 %vm383_vm0, %v2006_v59  ;;  %2482 = vmatpush.msk.msra.mxu0 %vm383_vm0, %v2101_v5  ;;  %v2948_v42 = vadd.f32 %v996_v60, %v739_v46 }
 0x1c9   : > { %2480 = vmatmul.msk.f32.vlgmr.msrb.gmra.mxu3 %vm379_vm1, %v2474_v52  ;;  %2483 = vmatmul.msk.f32.vlgmr.msra.gmra.mxu0 %vm379_vm1, %v2481_v54 }
 0x1ce   : > { %v2097_v7 = vpop.permute.xlu0 %2096  ;;  %v2099_v8 = vpop.permute.xlu1 %2098 }
 0x1cf   : > { %v2102_v61 = vsel %vm2100_vm9, %v2095_v62, %v2097_v7  ;;  %v2103_v2 = vsel %vm2100_vm9, %v2097_v7, %v2099_v8  ;;  %v1016_v9 = vpop.f32.mrf.mxu1 }
 0x1d0   : > { %2484 = vmatpush.msk.msra.mxu1 %vm383_vm0, %v2102_v61  ;;  %2486 = vmatpush.msk.msra.mxu2 %vm383_vm0, %v2103_v2  ;;  %v1040_v10 = vadd.f32 %v1016_v9, %v759_v43 }
 0x1d1   : > { %2485 = vmatmul.msk.f32.vlgmr.msra.gmra.mxu1 %vm379_vm1, %v2481_v54  ;;  %2487 = vmatmul.msk.f32.vlgmr.msra.gmra.mxu2 %vm379_vm1, %v2481_v54 }
 0x1d4   : > { %v1036_v18 = vpop.f32.mrf.mxu2 }
 0x1d5   : > { %v1041_v51 = vadd.f32 %v1036_v18, %v2917_v44 }
 0x1d6   : > { %v2188_v11 = vpop.permute.xlu0 %2187  ;;  %v2190_v12 = vpop.permute.xlu1 %2189 }
 0x1d7   : > { %v2193_v14 = vsel %vm2100_vm9, %v2186_v6, %v2188_v11  ;;  %v2194_v15 = vsel %vm2100_vm9, %v2188_v11, %v2190_v12  ;;  %v2195_v16 = vsel %vm2100_vm9, %v2190_v12, %v2192_v49  ;;  %v1108_v19 = vpop.f32.mrf.mxu0  ;;  %v1128_v20 = vpop.f32.mrf.mxu1 }
 0x1d8   : > { %2489 = vmatpush.msk.msra.mxu3 %vm383_vm0, %v2193_v14  ;;  %2491 = vmatpush.msk.msrb.mxu0 %vm383_vm0, %v2194_v15  ;;  %v1132_v56 = vadd.f32 %v1108_v19, %v2939_v1  ;;  %v1133_v57 = vadd.f32 %v1128_v20, %v943_v48 }
 0x1d9   : > { %2490 = vmatmul.msk.f32.vlgmr.msra.gmra.mxu3 %vm379_vm1, %v2488_v13  ;;  %2493 = vmatpush.msk.msrb.mxu1 %vm383_vm0, %v2195_v16 }
 0x1da   : > { %2492 = vmatmul.msk.f32.vlgmr.msrb.gmra.mxu0 %vm379_vm1, %v2488_v13  ;;  %2494 = vmatmul.msk.f32.vlgmr.msrb.gmra.mxu1 %vm379_vm1, %v2488_v13 }
 0x1dc   : > { %v1088_v21 = vpop.f32.mrf.mxu3 }
 0x1dd   : > { %v1131_v59 = vadd.f32 %v1088_v21, %v2926_v53 }
 0x1e4   : > { %v1185_v22 = vpop.f32.mrf.mxu2  ;;  %v1205_v25 = vpop.f32.mrf.mxu3 }
 0x1e5   : > { %v1229_v63 = vadd.f32 %v1205_v25, %v1040_v10  ;;  %v1228_v58 = vadd.f32 %v1185_v22, %v2948_v42 }
 0x1e6   : > { %v1225_v23 = vpop.f32.mrf.mxu0  ;;  %v1277_v24 = vpop.f32.mrf.mxu1 }
 0x1e7   : > { %v1230_v62 = vadd.f32 %v1225_v23, %v1041_v51  ;;  %v1320_v1 = vadd.f32 %v1277_v24, %v1131_v59 }
 0x1ed   : > { %v2281_v23 = vpop.permute.xlu1 %2280 }
 0x1f4   : > { %v1297_v26 = vpop.f32.mrf.mxu2  ;;  %v1317_v29 = vpop.f32.mrf.mxu3 }
 0x1f5   : > { %v1321_v3 = vadd.f32 %v1297_v26, %v1132_v56  ;;  %v1322_v4 = vadd.f32 %v1317_v29, %v1133_v57 }
 0x1f6   : > { %v1374_v27 = vpop.f32.mrf.mxu0 }
 0x1f7   : > { %v1394_v28 = vpop.f32.mrf.mxu1  ;;  %v1417_v12 = vadd.f32 %v1374_v27, %v1228_v58 }
 0x1f8   : > { %v1418_v5 = vadd.f32 %v1394_v28, %v1229_v63 }
 0x1fd   : > { %v1414_v30 = vpop.f32.mrf.mxu2 }
 0x1fe   : > { %v1486_v31 = vpop.f32.mrf.mxu0  ;;  %v1419_v60 = vadd.f32 %v1414_v30, %v1230_v62  ;;  %v2272_v30 = vpop.permute.xlu0 %2271 }
 0x1ff   : > { %v1510_v44 = vadd.f32 %v1486_v31, %v1321_v3 }
 0x204   : > { %v1466_v33 = vpop.f32.mrf.mxu3 }
 0x205   : > { %v1509_v42 = vadd.f32 %v1466_v33, %v1320_v1 }
 0x206   : > { %v1506_v32 = vpop.f32.mrf.mxu1 }
 0x207   : > { %v1511_v8 = vadd.f32 %v1506_v32, %v1322_v4 }
 0x20c   : > { %v1563_v34 = vpop.f32.mrf.mxu2 }
 0x20d   : > { %v1606_v18 = vadd.f32 %v1563_v34, %v1417_v12 }
 0x20e   : > { %v1603_v35 = vpop.f32.mrf.mxu0 }
 0x20f   : > { %v1608_v61 = vadd.f32 %v1603_v35, %v1419_v60 }
 0x214   : > { %v1583_v37 = vpop.f32.mrf.mxu3 }
 0x215   : > { %v1607_v2 = vadd.f32 %v1583_v37, %v1418_v5 }
 0x216   : > { %v1655_v36 = vpop.f32.mrf.mxu1 }
 0x217   : > { %v1698_v24 = vadd.f32 %v1655_v36, %v1509_v42 }
 0x21d   : > { %v1675_v38 = vpop.f32.mrf.mxu2  ;;  %v1695_v41 = vpop.f32.mrf.mxu3 }
 0x21e   : > { %v1752_v39 = vpop.f32.mrf.mxu0  ;;  %v1772_v40 = vpop.f32.mrf.mxu1  ;;  %v1699_v9 = vadd.f32 %v1675_v38, %v1510_v44  ;;  %v1700_v49 = vadd.f32 %v1695_v41, %v1511_v8 }
 0x21f   : > { %v1796_v10 = vadd.f32 %v1772_v40, %v1607_v2  ;;  %v1795_v25 = vadd.f32 %v1752_v39, %v1606_v18 }
 0x22c   : > { %v1792_v43 = vpop.f32.mrf.mxu2  ;;  %v1844_v47 = vpop.f32.mrf.mxu3 }
 0x22d   : > { %v1797_v11 = vadd.f32 %v1792_v43, %v1608_v61  ;;  %v1887_v31 = vadd.f32 %v1844_v47, %v1698_v24 }
 0x22e   : > { %v1864_v45 = vpop.f32.mrf.mxu0  ;;  %v1884_v46 = vpop.f32.mrf.mxu1 }
 0x22f   : > { %v1888_v14 = vadd.f32 %v1864_v45, %v1699_v9  ;;  %v1889_v53 = vadd.f32 %v1884_v46, %v1700_v49 }
 0x237   : > { %v1981_v52 = vpop.f32.mrf.mxu0 }
 0x238   : > { %v1986_v15 = vadd.f32 %v1981_v52, %v1797_v11 }
 0x23c   : > { %v1941_v50 = vpop.f32.mrf.mxu2 }
 0x23d   : > { %v1961_v0 = vpop.f32.mrf.mxu3  ;;  %v1984_v32 = vadd.f32 %v1941_v50, %v1795_v25 }
 0x23e   : > { %v2033_v55 = vpop.f32.mrf.mxu1  ;;  %v1985_v16 = vadd.f32 %v1961_v0, %v1796_v10 }
 0x23f   : > { %v2076_v34 = vadd.f32 %v2033_v55, %v1887_v31 }
 0x244   : > { %v2053_v54 = vpop.f32.mrf.mxu2 }
 0x245   : > { %v2077_v19 = vadd.f32 %v2053_v54, %v1888_v14 }
 0x246   : > { %v2130_v6 = vpop.f32.mrf.mxu0 }
 0x247   : > { %v2173_v40 = vadd.f32 %v2130_v6, %v1984_v32 }
 0x249   : > { %v2274_v45 = vadd.f32 %v2272_v30, %v2173_v40 }
 0x24c   : > { %v2073_v13 = vpop.f32.mrf.mxu3 }
 0x24d   : > { %v2078_v20 = vadd.f32 %v2073_v13, %v1889_v53 }
 0x24e   : > { %v2150_v7 = vpop.f32.mrf.mxu1 }
 0x24f   : > { %v2174_v21 = vadd.f32 %v2150_v7, %v1985_v16 }
 0x251   : > { %v2275_v35 = vadd.f32 %v2272_v30, %v2174_v21 }
 0x254   : > { %v2170_v17 = vpop.f32.mrf.mxu2 }
 0x255   : > { %v2175_v22 = vadd.f32 %v2170_v17, %v1986_v15 }
 0x257   : > { %v2242_v26 = vpop.f32.mrf.mxu0  ;;  %v2262_v28 = vpop.f32.mrf.mxu1  ;;  %v2276_v37 = vadd.f32 %v2272_v30, %v2175_v22 }
 0x258   : > { %v2266_v27 = vadd.f32 %v2242_v26, %v2077_v19  ;;  %v2267_v29 = vadd.f32 %v2262_v28, %v2078_v20 }
 0x25a   : > { %v2284_v38 = vadd.f32 %v2281_v23, %v2266_v27  ;;  %v2285_v33 = vadd.f32 %v2281_v23, %v2267_v29 }
 0x25c   : > { %v2287_v36 = vmax.f32 %v2275_v35, %v2284_v38  ;;  %v2288_v39 = vmax.f32 %v2276_v37, %v2285_v33  ;;  %v2222_v41 = vpop.f32.mrf.mxu3 }
 0x25d   : > { %v2265_v43 = vadd.f32 %v2222_v41, %v2076_v34 }
 0x25e   : > { %2290 = vst [vmem:[%s359_s26 + $0x8] sm:$0xff] %v2287_v36 }
 0x25f   : > { %2291 = vst [vmem:[%s359_s26 + $0x10] sm:$0xff] %v2288_v39  ;;  %v2283_v46 = vadd.f32 %v2281_v23, %v2265_v43 }
 0x261   : > { %v2286_v47 = vmax.f32 %v2274_v45, %v2283_v46 }
 0x263   : > { %2289 = vst [vmem:[%s359_s26] sm:$0xff] %v2286_v47 }
 0x264 PF: > { %s20_s13 = sadd.s32 1, %s2524_s13  }
 0x265   : > { %p17_p4 = scmp.ge.s32.totalorder %s20_s13, 4  }
 0x267   :  { %19 = sbr.rel (!%p17_p4) target bundleno = 1 (0x1), region = 126 }

</bundles_post_ra>
